<compile_context>
chip_gen: v5e
topology: v5e:2x2
jax: 0.10.0
libtpu: 0.0.40
codegen_flags: <defaults>
</compile_context>

<pallas_src>
import functools

import jax
import jax.numpy as jnp
from jax.experimental import pallas as pl
from jax.experimental.pallas import tpu as pltpu


def _round_up(x, m):
    return (x + m - 1) // m * m


def _select_tiling():
    """Generation-aware tile sizes and VMEM budget."""
    vmem_bytes = 64 * 1024 * 1024
    try:
        info = pltpu.get_tpu_info()
        vmem_bytes = int(getattr(info, "vmem_capacity_bytes", vmem_bytes))
    except Exception:
        pass
    if vmem_bytes >= 96 * 1024 * 1024:
        # v5e / v6e: 128 MiB VMEM -> big row tiles, bigger hidden slabs.
        return dict(block_m=768, block_h=1024, vmem_limit=96 * 1024 * 1024)
    # v7x (64 MiB / TensorCore) or unknown: tighter budget, smaller tiles.
    return dict(block_m=384, block_h=512, vmem_limit=56 * 1024 * 1024)


_TILING = _select_tiling()


def prepare_ffn_weights(w1, w2, w3, *, block_h=None, compute_dtype=jnp.bfloat16):
    """One-time weight prep (do at load time, NOT per forward call).

    Inputs use PyTorch nn.Linear layout: w1, w3: (hidden, dim); w2: (dim, hidden).
    Returns:
      w1t, w3t: (dim_p, hidden_p)  compute_dtype
      w2t     : (hidden_p, dim_p)  compute_dtype
    with dim padded to a multiple of 128 and hidden padded to a multiple of the
    hidden slab size (zero rows/cols are exact no-ops through SwiGLU).
    """
    if block_h is None:
        block_h = _TILING["block_h"]
    hidden, dim = w1.shape
    assert w3.shape == (hidden, dim) and w2.shape == (dim, hidden)

    dim_p = _round_up(dim, 128)
    bh = min(block_h, _round_up(hidden, 128))
    hidden_p = _round_up(hidden, bh)
    pad_d, pad_h = dim_p - dim, hidden_p - hidden

    w1t = jnp.pad(w1.T, ((0, pad_d), (0, pad_h))).astype(compute_dtype)
    w3t = jnp.pad(w3.T, ((0, pad_d), (0, pad_h))).astype(compute_dtype)
    w2t = jnp.pad(w2.T, ((0, pad_h), (0, pad_d))).astype(compute_dtype)
    return w1t, w2t, w3t


def _ffn_kernel(x_ref, w1_ref, w3_ref, w2_ref, o_ref, acc_ref):
    # x_ref  : (bm, dim_p)     compute dtype (bf16)
    # w1_ref : (dim_p, bh)     canonical K-leading layout
    # w3_ref : (dim_p, bh)
    # w2_ref : (bh, dim_p)
    # o_ref  : (bm, dim_p)     output dtype
    # acc_ref: (bm, dim_p)     f32 accumulator, resident across the hidden axis
    h = pl.program_id(1)

    @pl.when(h == 0)
    def _():
        acc_ref[...] = jnp.zeros_like(acc_ref)

    x = x_ref[...]
    h1 = jnp.dot(x, w1_ref[...], preferred_element_type=jnp.float32)
    h3 = jnp.dot(x, w3_ref[...], preferred_element_type=jnp.float32)
    # SiLU(h1) * h3 in f32 (sigmoid goes to the EUP slot; mul on the VPU).
    g = (h1 * jax.nn.sigmoid(h1)) * h3
    # Partial down-projection for this hidden slab; accumulate in f32.
    acc_ref[...] += jnp.dot(g.astype(w2_ref.dtype), w2_ref[...],
                            preferred_element_type=jnp.float32)

    @pl.when(h == pl.num_programs(1) - 1)
    def _():
        o_ref[...] = acc_ref[...].astype(o_ref.dtype)


@functools.partial(jax.jit,
                   static_argnames=("block_m", "block_h", "vmem_limit_bytes",
                                    "compute_dtype"))
def feed_forward(x, w1t, w2t, w3t, *, block_m=None, block_h=None,
                 vmem_limit_bytes=None, compute_dtype=jnp.bfloat16):
    """SwiGLU FFN: w2(silu(w1(x)) * w3(x)) with pre-prepared weights.

    x: (..., dim); (w1t, w2t, w3t) from prepare_ffn_weights().
    """
    if block_m is None:
        block_m = _TILING["block_m"]
    if block_h is None:
        block_h = _TILING["block_h"]
    if vmem_limit_bytes is None:
        vmem_limit_bytes = _TILING["vmem_limit"]

    orig_shape = x.shape
    out_dtype = x.dtype
    dim = orig_shape[-1]
    dim_p, hidden_p = w1t.shape
    assert w3t.shape == (dim_p, hidden_p) and w2t.shape == (hidden_p, dim_p)
    assert dim <= dim_p

    x2d = x.reshape(-1, dim).astype(compute_dtype)
    M = x2d.shape[0]
    if dim_p != dim:
        x2d = jnp.pad(x2d, ((0, 0), (0, dim_p - dim)))

    # Row tile sized from the actual M (minimizes zero-row padding), <= block_m.
    n_row_blocks = max(1, pl.cdiv(M, block_m))
    bm = min(_round_up(pl.cdiv(M, n_row_blocks), 8), _round_up(block_m, 8))
    M_p = _round_up(M, bm)
    if M_p != M:
        x2d = jnp.pad(x2d, ((0, M_p - M), (0, 0)))

    # Hidden slab; weight prep guarantees hidden_p % bh == 0 for matching block_h.
    bh = min(block_h, hidden_p)
    if hidden_p % bh != 0 or (bh % 128 != 0 and bh != hidden_p):
        raise ValueError("block_h must match the one used in prepare_ffn_weights")

    grid = (M_p // bm, hidden_p // bh)

    cbytes = jnp.dtype(compute_dtype).itemsize
    n_row = M_p // bm
    cost = pl.CostEstimate(
        flops=6 * M_p * dim_p * hidden_p,
        transcendentals=M_p * hidden_p,
        bytes_accessed=(M_p * dim_p * cbytes                      # x read
                        + n_row * 3 * hidden_p * dim_p * cbytes   # weights per row block
                        + M_p * dim_p * jnp.dtype(out_dtype).itemsize),
    )

    out = pl.pallas_call(
        _ffn_kernel,
        out_shape=jax.ShapeDtypeStruct((M_p, dim_p), out_dtype),
        grid_spec=pltpu.PrefetchScalarGridSpec(
            num_scalar_prefetch=0,
            grid=grid,
            in_specs=[
                pl.BlockSpec((bm, dim_p), lambda i, h: (i, 0)),    # x rows
                pl.BlockSpec((dim_p, bh), lambda i, h: (0, h)),    # w1 slab
                pl.BlockSpec((dim_p, bh), lambda i, h: (0, h)),    # w3 slab
                pl.BlockSpec((bh, dim_p), lambda i, h: (h, 0)),    # w2 slab (contiguous)
            ],
            out_specs=pl.BlockSpec((bm, dim_p), lambda i, h: (i, 0)),
            scratch_shapes=[pltpu.VMEM((bm, dim_p), jnp.float32)],
        ),
        compiler_params=pltpu.CompilerParams(
            dimension_semantics=("parallel", "arbitrary"),
            vmem_limit_bytes=vmem_limit_bytes,
        ),
        cost_estimate=cost,
    )(x2d, w1t, w3t, w2t)

    out = out[:M, :dim]
    return out.reshape(orig_shape)


if __name__ == "__main__":
    # Mirror FeedForward.__init__ hidden-dim computation.
    dim = 256
    hidden_dim = 512
    multiple_of = 128
    ffn_dim_multiplier = None
    if ffn_dim_multiplier is not None:
        hidden_dim = int(ffn_dim_multiplier * hidden_dim)
    hidden_dim = multiple_of * ((hidden_dim + multiple_of - 1) // multiple_of)  # -> 512

    batch, seq = 2, 8

    key = jax.random.PRNGKey(0)
    kx, k1, k2, k3 = jax.random.split(key, 4)
    x = jax.random.normal(kx, (batch, seq, dim), dtype=jnp.float32)
    # PyTorch nn.Linear weight shapes: (out_features, in_features)
    w1 = jax.random.normal(k1, (hidden_dim, dim), dtype=jnp.float32) * 0.05
    w2 = jax.random.normal(k2, (dim, hidden_dim), dtype=jnp.float32) * 0.05
    w3 = jax.random.normal(k3, (hidden_dim, dim), dtype=jnp.float32) * 0.05

    # One-time weight prep (cast / pad / transpose) -- outside the per-call path.
    w1t, w2t, w3t = prepare_ffn_weights(w1, w2, w3)

    out = jax.block_until_ready(feed_forward(x, w1t, w2t, w3t))

    # Reference with the same bf16 operand rounding (MXU inputs bf16, acc f32).
    def _ref_feed_forward(x, w1, w2, w3):
        f = lambda a: a.astype(jnp.bfloat16).astype(jnp.float32)
        xb, w1b, w2b, w3b = f(x), f(w1), f(w2), f(w3)
        h1 = xb @ w1b.T
        h3 = xb @ w3b.T
        g = (h1 * jax.nn.sigmoid(h1)) * h3
        return f(g) @ w2b.T

    ref = _ref_feed_forward(x, w1, w2, w3)
    assert out.shape == x.shape
    err = jnp.max(jnp.abs(out - ref))
    assert jnp.allclose(out, ref, atol=2e-2, rtol=2e-2), \
        f"mismatch vs reference (max abs err {err})"

    print("KERNEL_OK")
</pallas_src>

<mosaic_0001>
module attributes {stable_mosaic.version = 11 : i64} {
  func.func @_ffn_kernel(%arg0: i32, %arg1: i32, %arg2: memref<16x256xbf16, #tpu.memory_space<vmem>>, %arg3: memref<256x512xbf16, #tpu.memory_space<vmem>>, %arg4: memref<256x512xbf16, #tpu.memory_space<vmem>>, %arg5: memref<512x256xbf16, #tpu.memory_space<vmem>>, %arg6: memref<16x256xf32, #tpu.memory_space<vmem>>, %arg7: memref<16x256xf32, #tpu.memory_space<vmem>>) attributes {dimension_semantics = [#tpu.dimension_semantics<parallel>, #tpu.dimension_semantics<arbitrary>], iteration_bounds = array<i64: 1, 1>, scalar_prefetch = 0 : i64, scratch_operands = 1 : i64, tpu.core_type = #tpu.core_type<tc>, window_params = [{transform_indices = @transform_0, window_bounds = array<i64: 16, 256>}, {transform_indices = @transform_1, window_bounds = array<i64: 256, 512>}, {transform_indices = @transform_2, window_bounds = array<i64: 256, 512>}, {transform_indices = @transform_3, window_bounds = array<i64: 512, 256>}, {transform_indices = @transform_4, window_bounds = array<i64: 16, 256>}]} {
    %c0_i32 = arith.constant 0 : i32
    %0 = arith.cmpi eq, %arg1, %c0_i32 : i32
    %1 = arith.extui %0 : i1 to i32
    %c0_i32_0 = arith.constant 0 : i32
    %2 = arith.cmpi ne, %1, %c0_i32_0 : i32
    scf.if %2 {
      %cst_17 = arith.constant 0.000000e+00 : f32
      %24 = vector.broadcast %cst_17 : f32 to vector<16x256xf32>
      %c0_18 = arith.constant 0 : index
      %c0_19 = arith.constant 0 : index
      %25 = vector.load %arg7[%c0_18, %c0_19] : memref<16x256xf32, #tpu.memory_space<vmem>>, vector<16x256xf32>
      tpu.vector_store %arg7[%c0_18, %c0_19], %24 {strides = array<i32>} : memref<16x256xf32, #tpu.memory_space<vmem>>, vector<16x256xf32>,
    } else {
    }
    %c0 = arith.constant 0 : index
    %c0_1 = arith.constant 0 : index
    %3 = vector.load %arg2[%c0, %c0_1] : memref<16x256xbf16, #tpu.memory_space<vmem>>, vector<16x256xbf16>
    %c0_2 = arith.constant 0 : index
    %c0_3 = arith.constant 0 : index
    %4 = vector.load %arg3[%c0_2, %c0_3] : memref<256x512xbf16, #tpu.memory_space<vmem>>, vector<256x512xbf16>
    %cst = arith.constant dense<0.000000e+00> : vector<16x512xf32>
    %5 = tpu.matmul %3, %4, %cst {dimension_numbers = #tpu.dot_dimension_numbers<[1], [0], [0], [1], [0, 0, 1, 1], [], []>} : vector<16x256xbf16>, vector<256x512xbf16>, vector<16x512xf32> -> vector<16x512xf32>
    %c0_4 = arith.constant 0 : index
    %c0_5 = arith.constant 0 : index
    %6 = vector.load %arg4[%c0_4, %c0_5] : memref<256x512xbf16, #tpu.memory_space<vmem>>, vector<256x512xbf16>
    %cst_6 = arith.constant dense<0.000000e+00> : vector<16x512xf32>
    %7 = tpu.matmul %3, %6, %cst_6 {dimension_numbers = #tpu.dot_dimension_numbers<[1], [0], [0], [1], [0, 0, 1, 1], [], []>} : vector<16x256xbf16>, vector<256x512xbf16>, vector<16x512xf32> -> vector<16x512xf32>
    %8 = arith.negf %5 : vector<16x512xf32>
    %9 = math.exp %8 : vector<16x512xf32>
    %cst_7 = arith.constant 1.000000e+00 : f32
    %10 = vector.broadcast %cst_7 : f32 to vector<16x512xf32>
    %11 = arith.addf %10, %9 : vector<16x512xf32>
    %12 = arith.divf %10, %11 : vector<16x512xf32>
    %13 = arith.mulf %5, %12 : vector<16x512xf32>
    %14 = arith.mulf %13, %7 : vector<16x512xf32>
    %c0_8 = arith.constant 0 : index
    %c0_9 = arith.constant 0 : index
    %15 = vector.load %arg7[%c0_8, %c0_9] : memref<16x256xf32, #tpu.memory_space<vmem>>, vector<16x256xf32>
    %16 = arith.truncf %14 : vector<16x512xf32> to vector<16x512xbf16>
    %c0_10 = arith.constant 0 : index
    %c0_11 = arith.constant 0 : index
    %17 = vector.load %arg5[%c0_10, %c0_11] : memref<512x256xbf16, #tpu.memory_space<vmem>>, vector<512x256xbf16>
    %cst_12 = arith.constant dense<0.000000e+00> : vector<16x256xf32>
    %18 = tpu.matmul %16, %17, %cst_12 {dimension_numbers = #tpu.dot_dimension_numbers<[1], [0], [0], [1], [0, 0, 1, 1], [], []>} : vector<16x512xbf16>, vector<512x256xbf16>, vector<16x256xf32> -> vector<16x256xf32>
    %19 = arith.addf %15, %18 : vector<16x256xf32>
    %c0_13 = arith.constant 0 : index
    %c0_14 = arith.constant 0 : index
    %20 = vector.load %arg7[%c0_13, %c0_14] : memref<16x256xf32, #tpu.memory_space<vmem>>, vector<16x256xf32>
    tpu.vector_store %arg7[%c0_13, %c0_14], %19 {strides = array<i32>} : memref<16x256xf32, #tpu.memory_space<vmem>>, vector<16x256xf32>,
    %c0_i32_15 = arith.constant 0 : i32
    %21 = arith.cmpi eq, %arg1, %c0_i32_15 : i32
    %22 = arith.extui %21 : i1 to i32
    %c0_i32_16 = arith.constant 0 : i32
    %23 = arith.cmpi ne, %22, %c0_i32_16 : i32
    scf.if %23 {
      %c0_17 = arith.constant 0 : index
      %c0_18 = arith.constant 0 : index
      %24 = vector.load %arg7[%c0_17, %c0_18] : memref<16x256xf32, #tpu.memory_space<vmem>>, vector<16x256xf32>
      %c0_19 = arith.constant 0 : index
      %c0_20 = arith.constant 0 : index
      %25 = vector.load %arg6[%c0_19, %c0_20] : memref<16x256xf32, #tpu.memory_space<vmem>>, vector<16x256xf32>
      tpu.vector_store %arg6[%c0_19, %c0_20], %24 {strides = array<i32>} : memref<16x256xf32, #tpu.memory_space<vmem>>, vector<16x256xf32>,
    } else {
    }
    return
  }
  func.func @transform_0(%arg0: i32, %arg1: i32) -> (i32, i32) {
    %c0_i32 = arith.constant 0 : i32
    %c0_i32_0 = arith.constant 0 : i32
    return %arg0, %c0_i32 : i32, i32
  }
  func.func @transform_1(%arg0: i32, %arg1: i32) -> (i32, i32) {
    %c0_i32 = arith.constant 0 : i32
    %c0_i32_0 = arith.constant 0 : i32
    return %c0_i32, %arg1 : i32, i32
  }
  func.func @transform_2(%arg0: i32, %arg1: i32) -> (i32, i32) {
    %c0_i32 = arith.constant 0 : i32
    %c0_i32_0 = arith.constant 0 : i32
    return %c0_i32, %arg1 : i32, i32
  }
  func.func @transform_3(%arg0: i32, %arg1: i32) -> (i32, i32) {
    %c0_i32 = arith.constant 0 : i32
    %c0_i32_0 = arith.constant 0 : i32
    return %arg1, %c0_i32 : i32, i32
  }
  func.func @transform_4(%arg0: i32, %arg1: i32) -> (i32, i32) {
    %c0_i32 = arith.constant 0 : i32
    %c0_i32_0 = arith.constant 0 : i32
    return %arg0, %c0_i32 : i32, i32
  }
}

</mosaic_0001>

<bundles_post_ra>
// kernel: feed_forward.1
= control target key start
LH: loop header
LB: loop body
LE: loop exit
PB: predicated region body
PF: predicated region fallthrough
CT: control target
= control target key end

     0   :  { %9 = vsyncpa [#allocation4], 0  ;;  %s3261_s0 = inlined_call_operand.vmem [shape: bf16[16,256], index: 0, kind: input, shape index: {}]   ;;  %s3262_s1 = inlined_call_operand.hbm [shape: bf16[256,512], index: 1, kind: input, shape index: {}]   ;;  %s3263_s2 = inlined_call_operand.hbm [shape: bf16[256,512], index: 2, kind: input, shape index: {}]   ;;  %s3264_s3 = inlined_call_operand.hbm [shape: bf16[512,256], index: 3, kind: input, shape index: {}]   ;;  %s3265_s4 = inlined_call_operand.hbm [shape: f32[16,256], index: 4, kind: output, shape index: {}]  }
   0x1   :  { %10 = vsyncpa [#allocation7], 0 }
   0x2   :  { %11 = vsyncpa [#allocation5], 0  ;;  %s31_s17 = sshll.u32 %s3263_s2, 4  ;;  %s2908_s18 = smov [#allocation6]   ;;  %s32_s17 = int_to_ptr.hbm [resolvable:$true] %s31_s17 }
   0x3   :  { %s33_s19 = sshll.u32 %s2908_s18, 4  ;;  %s18_s22 = sshll.u32 %s3262_s1, 4  ;;  %s34_s19 = int_to_ptr.vmem [resolvable:$true] %s33_s19  ;;  %s19_s22 = int_to_ptr.hbm [resolvable:$true] %s18_s22 }
   0x4   :  { %s2909_s23 = smov 256   ;;  %s2910_s24 = smov 16  }
   0x5   :  { %39 = dma.hbm_to_vmem [thread:$0]  %s32_s17, 8192, %s34_s19, [#allocation7], %s2909_s23, %s2909_s23, %s2910_s24  }
   0x6   :  { %s2911_s25 = smov [#allocation3]   ;;  %s44_s2 = sshll.u32 %s3264_s3, 4  ;;  %s45_s2 = int_to_ptr.hbm [resolvable:$true] %s44_s2 }
   0x7   :  { %s20_s26 = sshll.u32 %s2911_s25, 4  ;;  %s2912_s1 = smov [#allocation8]   ;;  %s21_s26 = int_to_ptr.vmem [resolvable:$true] %s20_s26 }
   0x8   :  { %26 = dma.hbm_to_vmem [thread:$0]  %s19_s22, 8192, %s21_s26, [#allocation4], %s2909_s23, %s2909_s23, %s2910_s24  }
   0x9   :  { %s46_s29 = sshll.u32 %s2912_s1, 4  ;;  %s2913_s30 = smov 128   ;;  %s47_s29 = int_to_ptr.vmem [resolvable:$true] %s46_s29 }
   0xa   :  { %s2914_s5 = smov 8  }
   0xb   :  { %52 = dma.hbm_to_vmem [thread:$0]  %s45_s2, 8192, %s47_s29, [#allocation7], %s2913_s30, %s2913_s30, %s2914_s5  }
   0xc   :  { %2902 = dma.done.wait [#allocation4], 8192  }
   0xd   :  { %2903 = vsyncadd [#allocation4], 4294959104 }
   0xe   :  { %2904 = dma.done.wait [#allocation7], 16384  }
   0xf   :  { %2905 = vsyncadd [#allocation7], 4294950912  ;;  %v1910_v0 = vld [vmem:[#allocation3 + $0xe0] sm:$0xf]  ;;  %v2604_v1 = vld [vmem:[#allocation3 + $0xec] sm:$0xf0] }
  0x10   :  { %v2038_v2 = vld [vmem:[#allocation3 + $0x1e0] sm:$0xf]  ;;  %v1911_v3 = vor.u32 %v2604_v1, %v1910_v0  ;;  %v2636_v4 = vld [vmem:[#allocation3 + $0x1ec] sm:$0xf0]  ;;  %v2602_v5 = vld [vmem:[#allocation3 + $0xe4] sm:$0xf] }
  0x11   :  { %v1912_v6 = vld [vmem:[#allocation3 + $0xf0] sm:$0xf0]  ;;  %v2039_v7 = vor.u32 %v2636_v4, %v2038_v2  ;;  %v2634_v9 = vld [vmem:[#allocation3 + $0x1e4] sm:$0xf]  ;;  %v1894_v11 = vld [vmem:[#allocation3 + $0xc0] sm:$0xf] }
  0x12   :  { %v1915_v8 = vor.u32 %v2602_v5, %v1912_v6  ;;  %v2040_v10 = vld [vmem:[#allocation3 + $0x1f0] sm:$0xf0]  ;;  %469 = vmatpush.bf16.msra.mxu0 %v1911_v3  ;;  %v2600_v13 = vld [vmem:[#allocation3 + $0xcc] sm:$0xf0]  ;;  %v2022_v14 = vld [vmem:[#allocation3 + $0x1c0] sm:$0xf] }
  0x13   :  { %v2043_v12 = vor.u32 %v2634_v9, %v2040_v10  ;;  %v2632_v15 = vld [vmem:[#allocation3 + $0x1cc] sm:$0xf0]  ;;  %483 = vmatpush.bf16.msra.mxu1 %v2039_v7  ;;  %v1895_v16 = vor.u32 %v2600_v13, %v1894_v11  ;;  %v2598_v18 = vld [vmem:[#allocation3 + $0xc4] sm:$0xf]  ;;  %v1896_v19 = vld [vmem:[#allocation3 + $0xd0] sm:$0xf0] }
  0x14   :  { %497 = vmatpush.bf16.msra.mxu2 %v1915_v8  ;;  %v2023_v17 = vor.u32 %v2632_v15, %v2022_v14  ;;  %v2630_v20 = vld [vmem:[#allocation3 + $0x1c4] sm:$0xf]  ;;  %v1899_v21 = vor.u32 %v2598_v18, %v1896_v19  ;;  %v2024_v22 = vld [vmem:[#allocation3 + $0x1d0] sm:$0xf0]  ;;  %v1878_v23 = vld [vmem:[#allocation3 + $0xa0] sm:$0xf] }
  0x15   :  { %511 = vmatpush.bf16.msra.mxu3 %v2043_v12  ;;  %v2596_v24 = vld [vmem:[#allocation3 + $0xac] sm:$0xf0]  ;;  %v2027_v25 = vor.u32 %v2630_v20, %v2024_v22  ;;  %v2006_v26 = vld [vmem:[#allocation3 + $0x1a0] sm:$0xf]  ;;  %v2594_v28 = vld [vmem:[#allocation3 + $0xa4] sm:$0xf] }
  0x16   :  { %v2628_v27 = vld [vmem:[#allocation3 + $0x1ac] sm:$0xf0]  ;;  %470 = vmatpush.bf16.msra.mxu0 %v1895_v16  ;;  %v1879_v29 = vor.u32 %v2596_v24, %v1878_v23  ;;  %v1880_v30 = vld [vmem:[#allocation3 + $0xb0] sm:$0xf0]  ;;  %v2626_v31 = vld [vmem:[#allocation3 + $0x1a4] sm:$0xf] }
  0x17   :  { %v2008_v32 = vld [vmem:[#allocation3 + $0x1b0] sm:$0xf0]  ;;  %484 = vmatpush.bf16.msra.mxu1 %v2023_v17  ;;  %v2007_v33 = vor.u32 %v2628_v27, %v2006_v26  ;;  %v1883_v34 = vor.u32 %v2594_v28, %v1880_v30  ;;  %v1862_v35 = vld [vmem:[#allocation3 + $0x80] sm:$0xf]  ;;  %v2592_v36 = vld [vmem:[#allocation3 + $0x8c] sm:$0xf0] }
  0x18   :  { %498 = vmatpush.bf16.msra.mxu2 %v1899_v21  ;;  %v1990_v37 = vld [vmem:[#allocation3 + $0x180] sm:$0xf]  ;;  %v2011_v38 = vor.u32 %v2626_v31, %v2008_v32  ;;  %v2624_v39 = vld [vmem:[#allocation3 + $0x18c] sm:$0xf0]  ;;  %v2590_v40 = vld [vmem:[#allocation3 + $0x84] sm:$0xf]  ;;  %v1863_v44 = vor.u32 %v2592_v36, %v1862_v35 }
  0x19   :  { %512 = vmatpush.bf16.msra.mxu3 %v2027_v25  ;;  %v1864_v41 = vld [vmem:[#allocation3 + $0x90] sm:$0xf0]  ;;  %v2622_v42 = vld [vmem:[#allocation3 + $0x184] sm:$0xf]  ;;  %v1991_v45 = vor.u32 %v2624_v39, %v1990_v37  ;;  %v1846_v47 = vld [vmem:[#allocation3 + $0x60] sm:$0xf] }
  0x1a   :  { %v1992_v43 = vld [vmem:[#allocation3 + $0x190] sm:$0xf0]  ;;  %471 = vmatpush.bf16.msra.mxu0 %v1879_v29  ;;  %v1867_v46 = vor.u32 %v2590_v40, %v1864_v41  ;;  %v2588_v48 = vld [vmem:[#allocation3 + $0x6c] sm:$0xf0]  ;;  %v1974_v49 = vld [vmem:[#allocation3 + $0x160] sm:$0xf] }
  0x1b   :  { %485 = vmatpush.bf16.msra.mxu1 %v2007_v33  ;;  %v1995_v50 = vor.u32 %v2622_v42, %v1992_v43  ;;  %v2620_v51 = vld [vmem:[#allocation3 + $0x16c] sm:$0xf0]  ;;  %v2586_v52 = vld [vmem:[#allocation3 + $0x64] sm:$0xf]  ;;  %v1848_v53 = vld [vmem:[#allocation3 + $0x70] sm:$0xf0]  ;;  %v1847_v56 = vor.u32 %v2588_v48, %v1846_v47 }
  0x1c   :  { %499 = vmatpush.bf16.msra.mxu2 %v1883_v34  ;;  %v2618_v54 = vld [vmem:[#allocation3 + $0x164] sm:$0xf]  ;;  %v1976_v55 = vld [vmem:[#allocation3 + $0x170] sm:$0xf0]  ;;  %v1975_v57 = vor.u32 %v2620_v51, %v1974_v49  ;;  %v1851_v58 = vor.u32 %v2586_v52, %v1848_v53  ;;  %v1830_v59 = vld [vmem:[#allocation3 + $0x40] sm:$0xf] }
  0x1d   :  { %513 = vmatpush.bf16.msra.mxu3 %v2011_v38  ;;  %v2584_v60 = vld [vmem:[#allocation3 + $0x4c] sm:$0xf0]  ;;  %v1958_v61 = vld [vmem:[#allocation3 + $0x140] sm:$0xf]  ;;  %v1979_v62 = vor.u32 %v2618_v54, %v1976_v55  ;;  %v2582_v0 = vld [vmem:[#allocation3 + $0x44] sm:$0xf] }
  0x1e   :  { %472 = vmatpush.bf16.msra.mxu0 %v1863_v44  ;;  %v2616_v63 = vld [vmem:[#allocation3 + $0x14c] sm:$0xf0]  ;;  %v1832_v1 = vld [vmem:[#allocation3 + $0x50] sm:$0xf0]  ;;  %v2614_v2 = vld [vmem:[#allocation3 + $0x144] sm:$0xf]  ;;  %v1831_v4 = vor.u32 %v2584_v60, %v1830_v59 }
  0x1f   :  { %486 = vmatpush.bf16.msra.mxu1 %v1991_v45  ;;  %v1960_v3 = vld [vmem:[#allocation3 + $0x150] sm:$0xf0]  ;;  %v1959_v5 = vor.u32 %v2616_v63, %v1958_v61  ;;  %v1835_v6 = vor.u32 %v2582_v0, %v1832_v1  ;;  %v1814_v7 = vld [vmem:[#allocation3 + $0x20] sm:$0xf]  ;;  %v2580_v8 = vld [vmem:[#allocation3 + $0x2c] sm:$0xf0] }
  0x20   :  { %500 = vmatpush.bf16.msra.mxu2 %v1867_v46  ;;  %v1942_v9 = vld [vmem:[#allocation3 + $0x120] sm:$0xf]  ;;  %v1963_v10 = vor.u32 %v2614_v2, %v1960_v3  ;;  %v2612_v11 = vld [vmem:[#allocation3 + $0x12c] sm:$0xf0]  ;;  %v2578_v12 = vld [vmem:[#allocation3 + $0x24] sm:$0xf]  ;;  %v1815_v16 = vor.u32 %v2580_v8, %v1814_v7 }
  0x21   :  { %514 = vmatpush.bf16.msra.mxu3 %v1995_v50  ;;  %v1816_v13 = vld [vmem:[#allocation3 + $0x30] sm:$0xf0]  ;;  %v2610_v14 = vld [vmem:[#allocation3 + $0x124] sm:$0xf]  ;;  %v1798_v17 = vld [vmem:[#allocation3] sm:$0xf]  ;;  %v1943_v20 = vor.u32 %v2612_v11, %v1942_v9 }
  0x22   :  { %473 = vmatpush.bf16.msra.mxu0 %v1847_v56  ;;  %v1944_v15 = vld [vmem:[#allocation3 + $0x130] sm:$0xf0]  ;;  %v2576_v18 = vld [vmem:[#allocation3 + $0xc] sm:$0xf0]  ;;  %v1926_v19 = vld [vmem:[#allocation3 + $0x100] sm:$0xf]  ;;  %v1819_v21 = vor.u32 %v2578_v12, %v1816_v13 }
  0x23   :  { %487 = vmatpush.bf16.msra.mxu1 %v1975_v57  ;;  %v2608_v22 = vld [vmem:[#allocation3 + $0x10c] sm:$0xf0]  ;;  %v2574_v23 = vld [vmem:[#allocation3 + $0x4] sm:$0xf]  ;;  %v1800_v24 = vld [vmem:[#allocation3 + $0x10] sm:$0xf0]  ;;  %v1947_v25 = vor.u32 %v2610_v14, %v1944_v15  ;;  %v1799_v32 = vor.u32 %v2576_v18, %v1798_v17 }
  0x24   :  { %501 = vmatpush.bf16.msra.mxu2 %v1851_v58  ;;  %v2606_v26 = vld [vmem:[#allocation3 + $0x104] sm:$0xf]  ;;  %v1928_v27 = vld [vmem:[#allocation3 + $0x110] sm:$0xf0]  ;;  %v1918_v28 = vld [vmem:[#allocation3 + $0xe8] sm:$0xf]  ;;  %v1927_v36 = vor.u32 %v2608_v22, %v1926_v19  ;;  %v1803_v37 = vor.u32 %v2574_v23, %v1800_v24 }
  0x25   :  { %515 = vmatpush.bf16.msra.mxu3 %v1979_v62  ;;  %v2605_v29 = vld [vmem:[#allocation3 + $0xf4] sm:$0xf0]  ;;  %v2046_v30 = vld [vmem:[#allocation3 + $0x1e8] sm:$0xf]  ;;  %v2603_v33 = vld [vmem:[#allocation3 + $0xec] sm:$0xf]  ;;  %v1931_v41 = vor.u32 %v2606_v26, %v1928_v27 }
  0x26   :  { %474 = vmatpush.bf16.msra.mxu0 %v1831_v4  ;;  %v2637_v31 = vld [vmem:[#allocation3 + $0x1f4] sm:$0xf0]  ;;  %v1920_v34 = vld [vmem:[#allocation3 + $0xf8] sm:$0xf0]  ;;  %v2635_v35 = vld [vmem:[#allocation3 + $0x1ec] sm:$0xf]  ;;  %v1919_v42 = vor.u32 %v2605_v29, %v1918_v28 }
  0x27   :  { %488 = vmatpush.bf16.msra.mxu1 %v1959_v5  ;;  %v2048_v38 = vld [vmem:[#allocation3 + $0x1f8] sm:$0xf0]  ;;  %v1790_v39 = vld [vmem:[%s3261_s0] sm:$0xf]  ;;  %v2573_v40 = vld [vmem:[%s3261_s0 + $0x4] sm:$0xf0]  ;;  %v2047_v45 = vor.u32 %v2637_v31, %v2046_v30  ;;  %v1923_v46 = vor.u32 %v2603_v33, %v1920_v34 }
  0x28   :  { %502 = vmatpush.bf16.msra.mxu2 %v1835_v6  ;;  %v2572_v43 = vld [vmem:[%s3261_s0 + $0x4] sm:$0xf]  ;;  %v1792_v44 = vld [vmem:[%s3261_s0 + $0x8] sm:$0xf0]  ;;  %v1902_v47 = vld [vmem:[#allocation3 + $0xc8] sm:$0xf]  ;;  %v2051_v50 = vor.u32 %v2635_v35, %v2048_v38  ;;  %v2968_v51 = vor.u32 %v2573_v40, %v1790_v39 }
  0x29   :  { %516 = vmatpush.bf16.msra.mxu3 %v1963_v10  ;;  %v2601_v48 = vld [vmem:[#allocation3 + $0xd4] sm:$0xf0]  ;;  %v2030_v49 = vld [vmem:[#allocation3 + $0x1c8] sm:$0xf]  ;;  %v2599_v53 = vld [vmem:[#allocation3 + $0xcc] sm:$0xf]  ;;  %v2970_v55 = vor.u32 %v2572_v43, %v1792_v44 }
  0x2a   :  { %475 = vmatpush.bf16.msra.mxu0 %v1815_v16  ;;  %v2633_v52 = vld [vmem:[#allocation3 + $0x1d4] sm:$0xf0]  ;;  %v1904_v54 = vld [vmem:[#allocation3 + $0xd8] sm:$0xf0]  ;;  %v2631_v56 = vld [vmem:[#allocation3 + $0x1cc] sm:$0xf]  ;;  %v1903_v58 = vor.u32 %v2601_v48, %v1902_v47 }
  0x2b   :  { %489 = vmatpush.bf16.msra.mxu1 %v1943_v20  ;;  %v2032_v57 = vld [vmem:[#allocation3 + $0x1d8] sm:$0xf0]  ;;  %v2031_v59 = vor.u32 %v2633_v52, %v2030_v49  ;;  %v1907_v60 = vor.u32 %v2599_v53, %v1904_v54  ;;  %v1886_v61 = vld [vmem:[#allocation3 + $0xa8] sm:$0xf]  ;;  %v2597_v62 = vld [vmem:[#allocation3 + $0xb4] sm:$0xf0] }
  0x2c   :  { %503 = vmatpush.bf16.msra.mxu2 %v1819_v21  ;;  %v2014_v63 = vld [vmem:[#allocation3 + $0x1a8] sm:$0xf]  ;;  %v2035_v0 = vor.u32 %v2631_v56, %v2032_v57  ;;  %v2629_v1 = vld [vmem:[#allocation3 + $0x1b4] sm:$0xf0]  ;;  %v2595_v2 = vld [vmem:[#allocation3 + $0xac] sm:$0xf]  ;;  %v1887_v6 = vor.u32 %v2597_v62, %v1886_v61 }
  0x2d   :  { %517 = vmatpush.bf16.msra.mxu3 %v1947_v25  ;;  %v1888_v3 = vld [vmem:[#allocation3 + $0xb8] sm:$0xf0]  ;;  %v2627_v4 = vld [vmem:[#allocation3 + $0x1ac] sm:$0xf]  ;;  %v2015_v7 = vor.u32 %v2629_v1, %v2014_v63  ;;  %v1870_v9 = vld [vmem:[#allocation3 + $0x88] sm:$0xf] }
  0x2e   :  { %476 = vmatpush.bf16.msra.mxu0 %v1799_v32  ;;  %v2016_v5 = vld [vmem:[#allocation3 + $0x1b8] sm:$0xf0]  ;;  %v1891_v8 = vor.u32 %v2595_v2, %v1888_v3  ;;  %v2593_v10 = vld [vmem:[#allocation3 + $0x94] sm:$0xf0]  ;;  %v1998_v11 = vld [vmem:[#allocation3 + $0x188] sm:$0xf] }
  0x2f   :  { %490 = vmatpush.bf16.msra.mxu1 %v1927_v36  ;;  %v2019_v12 = vor.u32 %v2627_v4, %v2016_v5  ;;  %v2625_v13 = vld [vmem:[#allocation3 + $0x194] sm:$0xf0]  ;;  %v2591_v14 = vld [vmem:[#allocation3 + $0x8c] sm:$0xf]  ;;  %v1872_v15 = vld [vmem:[#allocation3 + $0x98] sm:$0xf0]  ;;  %v1871_v18 = vor.u32 %v2593_v10, %v1870_v9 }
  0x30   :  { %504 = vmatpush.bf16.msra.mxu2 %v1803_v37  ;;  %v2623_v16 = vld [vmem:[#allocation3 + $0x18c] sm:$0xf]  ;;  %v2000_v17 = vld [vmem:[#allocation3 + $0x198] sm:$0xf0]  ;;  %v1999_v19 = vor.u32 %v2625_v13, %v1998_v11  ;;  %v1875_v20 = vor.u32 %v2591_v14, %v1872_v15  ;;  %v1854_v21 = vld [vmem:[#allocation3 + $0x68] sm:$0xf] }
  0x31   :  { %518 = vmatpush.bf16.msra.mxu3 %v1931_v41  ;;  %477 = vmatmul.bf16.vlgmr.msra.gmra.mxu0 %v2968_v51  ;;  %v2589_v22 = vld [vmem:[#allocation3 + $0x74] sm:$0xf0]  ;;  %v1982_v23 = vld [vmem:[#allocation3 + $0x168] sm:$0xf]  ;;  %v2003_v24 = vor.u32 %v2623_v16, %v2000_v17  ;;  %v2587_v26 = vld [vmem:[#allocation3 + $0x6c] sm:$0xf] }
  0x32   :  { %525 = vmatpush.bf16.msrb.mxu0 %v1919_v42  ;;  %491 = vmatmul.bf16.vlgmr.msra.gmra.mxu1 %v2970_v55  ;;  %v2621_v25 = vld [vmem:[#allocation3 + $0x174] sm:$0xf0]  ;;  %v1856_v27 = vld [vmem:[#allocation3 + $0x78] sm:$0xf0]  ;;  %v2619_v28 = vld [vmem:[#allocation3 + $0x16c] sm:$0xf]  ;;  %v1855_v30 = vor.u32 %v2589_v22, %v1854_v21 }
  0x33   :  { %539 = vmatpush.bf16.msrb.mxu1 %v2047_v45  ;;  %505 = vmatmul.bf16.vlgmr.msra.gmra.mxu2 %v2968_v51  ;;  %v1984_v29 = vld [vmem:[#allocation3 + $0x178] sm:$0xf0]  ;;  %v1983_v31 = vor.u32 %v2621_v25, %v1982_v23  ;;  %v1859_v32 = vor.u32 %v2587_v26, %v1856_v27  ;;  %v1838_v33 = vld [vmem:[#allocation3 + $0x48] sm:$0xf]  ;;  %v2585_v34 = vld [vmem:[#allocation3 + $0x54] sm:$0xf0] }
  0x34   :  { %553 = vmatpush.bf16.msrb.mxu2 %v1923_v46  ;;  %519 = vmatmul.bf16.vlgmr.msra.gmra.mxu3 %v2970_v55  ;;  %v1966_v35 = vld [vmem:[#allocation3 + $0x148] sm:$0xf]  ;;  %v1987_v36 = vor.u32 %v2619_v28, %v1984_v29  ;;  %v2617_v37 = vld [vmem:[#allocation3 + $0x154] sm:$0xf0]  ;;  %v2583_v38 = vld [vmem:[#allocation3 + $0x4c] sm:$0xf]  ;;  %v1839_v42 = vor.u32 %v2585_v34, %v1838_v33 }
  0x35   :  { %567 = vmatpush.bf16.msrb.mxu3 %v2051_v50  ;;  %v1840_v39 = vld [vmem:[#allocation3 + $0x58] sm:$0xf0]  ;;  %v2615_v40 = vld [vmem:[#allocation3 + $0x14c] sm:$0xf]  ;;  %v1967_v43 = vor.u32 %v2617_v37, %v1966_v35  ;;  %v1822_v45 = vld [vmem:[#allocation3 + $0x28] sm:$0xf] }
  0x36   :  { %526 = vmatpush.bf16.msrb.mxu0 %v1903_v58  ;;  %v1968_v41 = vld [vmem:[#allocation3 + $0x158] sm:$0xf0]  ;;  %v1843_v44 = vor.u32 %v2583_v38, %v1840_v39  ;;  %v2581_v46 = vld [vmem:[#allocation3 + $0x34] sm:$0xf0]  ;;  %v1950_v47 = vld [vmem:[#allocation3 + $0x128] sm:$0xf] }
  0x37   :  { %540 = vmatpush.bf16.msrb.mxu1 %v2031_v59  ;;  %v1971_v48 = vor.u32 %v2615_v40, %v1968_v41  ;;  %v2613_v49 = vld [vmem:[#allocation3 + $0x134] sm:$0xf0]  ;;  %v2579_v50 = vld [vmem:[#allocation3 + $0x2c] sm:$0xf]  ;;  %v1824_v52 = vld [vmem:[#allocation3 + $0x38] sm:$0xf0]  ;;  %v1823_v56 = vor.u32 %v2581_v46, %v1822_v45 }
  0x38   :  { %554 = vmatpush.bf16.msrb.mxu2 %v1907_v60  ;;  %v2611_v53 = vld [vmem:[#allocation3 + $0x12c] sm:$0xf]  ;;  %v1952_v54 = vld [vmem:[#allocation3 + $0x138] sm:$0xf0]  ;;  %v1806_v57 = vld [vmem:[#allocation3 + $0x8] sm:$0xf]  ;;  %v1951_v59 = vor.u32 %v2613_v49, %v1950_v47  ;;  %v1827_v60 = vor.u32 %v2579_v50, %v1824_v52 }
  0x39   :  { %568 = vmatpush.bf16.msrb.mxu3 %v2035_v0  ;;  %v2577_v58 = vld [vmem:[#allocation3 + $0x14] sm:$0xf0]  ;;  %v1934_v61 = vld [vmem:[#allocation3 + $0x108] sm:$0xf]  ;;  %v2575_v63 = vld [vmem:[#allocation3 + $0xc] sm:$0xf]  ;;  %v1955_v0 = vor.u32 %v2611_v53, %v1952_v54 }
  0x3a   :  { %527 = vmatpush.bf16.msrb.mxu0 %v1887_v6  ;;  %v2609_v62 = vld [vmem:[#allocation3 + $0x114] sm:$0xf0]  ;;  %v1808_v1 = vld [vmem:[#allocation3 + $0x18] sm:$0xf0]  ;;  %v2607_v2 = vld [vmem:[#allocation3 + $0x10c] sm:$0xf] }
  0x3b   :  { %541 = vmatpush.bf16.msrb.mxu1 %v2015_v7  ;;  %v1936_v3 = vld [vmem:[#allocation3 + $0x118] sm:$0xf0]  ;;  %v2166_v4 = vld [vmem:[#allocation6 + $0xe0] sm:$0xf]  ;;  %v2668_v5 = vld [vmem:[#allocation6 + $0xec] sm:$0xf0]  ;;  %v1807_v7 = vor.u32 %v2577_v58, %v1806_v57  ;;  %v1935_v11 = vor.u32 %v2609_v62, %v1934_v61 }
  0x3c   :  { %555 = vmatpush.bf16.msrb.mxu2 %v1891_v8  ;;  %v2294_v6 = vld [vmem:[#allocation6 + $0x1e0] sm:$0xf]  ;;  %v2700_v8 = vld [vmem:[#allocation6 + $0x1ec] sm:$0xf0]  ;;  %v2666_v9 = vld [vmem:[#allocation6 + $0xe4] sm:$0xf]  ;;  %v1939_v15 = vor.u32 %v2607_v2, %v1936_v3  ;;  %v2167_v16 = vor.u32 %v2668_v5, %v2166_v4 }
  0x3d   :  { %569 = vmatpush.bf16.msrb.mxu3 %v2019_v12  ;;  %v2168_v10 = vld [vmem:[#allocation6 + $0xf0] sm:$0xf0]  ;;  %v1811_v12 = vor.u32 %v2575_v63, %v1808_v1  ;;  %v2698_v13 = vld [vmem:[#allocation6 + $0x1e4] sm:$0xf]  ;;  %v2295_v17 = vor.u32 %v2700_v8, %v2294_v6  ;;  %v2278_v21 = vld [vmem:[#allocation6 + $0x1c0] sm:$0xf] }
  0x3e   :  { %528 = vmatpush.bf16.msrb.mxu0 %v1871_v18  ;;  %v2296_v14 = vld [vmem:[#allocation6 + $0x1f0] sm:$0xf0]  ;;  %v2171_v18 = vor.u32 %v2666_v9, %v2168_v10  ;;  %v2696_v23 = vld [vmem:[#allocation6 + $0x1cc] sm:$0xf0]  ;;  %v2694_v26 = vld [vmem:[#allocation6 + $0x1c4] sm:$0xf] }
  0x3f   :  { %542 = vmatpush.bf16.msrb.mxu1 %v1999_v19  ;;  %v2150_v19 = vld [vmem:[#allocation6 + $0xc0] sm:$0xf]  ;;  %v2299_v22 = vor.u32 %v2698_v13, %v2296_v14  ;;  %v2152_v25 = vld [vmem:[#allocation6 + $0xd0] sm:$0xf0]  ;;  %v2279_v29 = vor.u32 %v2696_v23, %v2278_v21  ;;  %v2692_v35 = vld [vmem:[#allocation6 + $0x1ac] sm:$0xf0] }
  0x40   :  { %556 = vmatpush.bf16.msrb.mxu2 %v1875_v20  ;;  %v2664_v20 = vld [vmem:[#allocation6 + $0xcc] sm:$0xf0]  ;;  %v2280_v27 = vld [vmem:[#allocation6 + $0x1d0] sm:$0xf0]  ;;  %v2262_v33 = vld [vmem:[#allocation6 + $0x1a0] sm:$0xf] }
  0x41   :  { %570 = vmatpush.bf16.msrb.mxu3 %v2003_v24  ;;  %v2662_v24 = vld [vmem:[#allocation6 + $0xc4] sm:$0xf]  ;;  %v2151_v28 = vor.u32 %v2664_v20, %v2150_v19  ;;  %v2283_v34 = vor.u32 %v2694_v26, %v2280_v27  ;;  %v2136_v37 = vld [vmem:[#allocation6 + $0xb0] sm:$0xf0]  ;;  %v2263_v41 = vor.u32 %v2692_v35, %v2262_v33  ;;  %v2246_v45 = vld [vmem:[#allocation6 + $0x180] sm:$0xf] }
  0x42   :  { %529 = vmatpush.bf16.msrb.mxu0 %v1855_v30  ;;  %v2155_v30 = vor.u32 %v2662_v24, %v2152_v25  ;;  %v2690_v38 = vld [vmem:[#allocation6 + $0x1a4] sm:$0xf]  ;;  %v2264_v39 = vld [vmem:[#allocation6 + $0x1b0] sm:$0xf0]  ;;  %v2688_v47 = vld [vmem:[#allocation6 + $0x18c] sm:$0xf0] }
  0x43   :  { %543 = vmatpush.bf16.msrb.mxu1 %v1983_v31  ;;  %v2134_v31 = vld [vmem:[#allocation6 + $0xa0] sm:$0xf]  ;;  %v2267_v46 = vor.u32 %v2690_v38, %v2264_v39  ;;  %v2120_v49 = vld [vmem:[#allocation6 + $0x90] sm:$0xf0]  ;;  %v2686_v50 = vld [vmem:[#allocation6 + $0x184] sm:$0xf]  ;;  %v2247_v54 = vor.u32 %v2688_v47, %v2246_v45 }
  0x44   :  { %557 = vmatpush.bf16.msrb.mxu2 %v1859_v32  ;;  %v2660_v32 = vld [vmem:[#allocation6 + $0xac] sm:$0xf0]  ;;  %v2248_v52 = vld [vmem:[#allocation6 + $0x190] sm:$0xf0]  ;;  %v2102_v57 = vld [vmem:[#allocation6 + $0x60] sm:$0xf] }
  0x45   :  { %571 = vmatpush.bf16.msrb.mxu3 %v1987_v36  ;;  %v2658_v36 = vld [vmem:[#allocation6 + $0xa4] sm:$0xf]  ;;  %v2135_v40 = vor.u32 %v2660_v32, %v2134_v31  ;;  %v2652_v58 = vld [vmem:[#allocation6 + $0x6c] sm:$0xf0]  ;;  %v2104_v63 = vld [vmem:[#allocation6 + $0x70] sm:$0xf0] }
  0x46   :  { %530 = vmatpush.bf16.msrb.mxu0 %v1839_v42  ;;  %v2139_v42 = vor.u32 %v2658_v36, %v2136_v37  ;;  %v2684_v61 = vld [vmem:[#allocation6 + $0x16c] sm:$0xf0]  ;;  %v2650_v62 = vld [vmem:[#allocation6 + $0x64] sm:$0xf]  ;;  %v2232_v1 = vld [vmem:[#allocation6 + $0x170] sm:$0xf0]  ;;  %v2103_v2 = vor.u32 %v2652_v58, %v2102_v57 }
  0x47   :  { %544 = vmatpush.bf16.msrb.mxu1 %v1967_v43  ;;  %v2118_v43 = vld [vmem:[#allocation6 + $0x80] sm:$0xf]  ;;  %v2107_v4 = vor.u32 %v2650_v62, %v2104_v63  ;;  %v2648_v6 = vld [vmem:[#allocation6 + $0x4c] sm:$0xf0]  ;;  %v2646_v10 = vld [vmem:[#allocation6 + $0x44] sm:$0xf] }
  0x48   :  { %558 = vmatpush.bf16.msrb.mxu2 %v1843_v44  ;;  %v2656_v44 = vld [vmem:[#allocation6 + $0x8c] sm:$0xf0]  ;;  %v2086_v5 = vld [vmem:[#allocation6 + $0x40] sm:$0xf]  ;;  %v2216_v13 = vld [vmem:[#allocation6 + $0x150] sm:$0xf0] }
  0x49   :  { %572 = vmatpush.bf16.msrb.mxu3 %v1971_v48  ;;  %v2654_v48 = vld [vmem:[#allocation6 + $0x84] sm:$0xf]  ;;  %v2119_v53 = vor.u32 %v2656_v44, %v2118_v43  ;;  %v2680_v9 = vld [vmem:[#allocation6 + $0x14c] sm:$0xf0]  ;;  %v2087_v14 = vor.u32 %v2648_v6, %v2086_v5  ;;  %v2198_v19 = vld [vmem:[#allocation6 + $0x120] sm:$0xf] }
  0x4a   :  { %531 = vmatpush.bf16.msrb.mxu0 %v1823_v56  ;;  %v2123_v56 = vor.u32 %v2654_v48, %v2120_v49  ;;  %v2676_v21 = vld [vmem:[#allocation6 + $0x12c] sm:$0xf0]  ;;  %v2072_v23 = vld [vmem:[#allocation6 + $0x30] sm:$0xf0]  ;;  %v2674_v24 = vld [vmem:[#allocation6 + $0x124] sm:$0xf] }
  0x4b   :  { %545 = vmatpush.bf16.msrb.mxu1 %v1951_v59  ;;  %v2230_v59 = vld [vmem:[#allocation6 + $0x160] sm:$0xf]  ;;  %v2200_v25 = vld [vmem:[#allocation6 + $0x130] sm:$0xf0]  ;;  %v2672_v32 = vld [vmem:[#allocation6 + $0x10c] sm:$0xf0] }
  0x4c   :  { %559 = vmatpush.bf16.msrb.mxu2 %v1827_v60  ;;  %v2251_v60 = vor.u32 %v2686_v50, %v2248_v52  ;;  %v2231_v3 = vor.u32 %v2684_v61, %v2230_v59  ;;  %v2054_v27 = vld [vmem:[#allocation6] sm:$0xf]  ;;  %v2638_v33 = vld [vmem:[#allocation6 + $0x4] sm:$0xf]  ;;  %v2056_v35 = vld [vmem:[#allocation6 + $0x10] sm:$0xf0] }
  0x4d   :  { %573 = vmatpush.bf16.msrb.mxu3 %v1955_v0  ;;  %v2682_v0 = vld [vmem:[#allocation6 + $0x164] sm:$0xf]  ;;  %v2182_v31 = vld [vmem:[#allocation6 + $0x100] sm:$0xf]  ;;  %v2184_v37 = vld [vmem:[#allocation6 + $0x110] sm:$0xf0] }
  0x4e   :  { %532 = vmatpush.bf16.msrb.mxu0 %v1807_v7  ;;  %v2214_v7 = vld [vmem:[#allocation6 + $0x140] sm:$0xf]  ;;  %v2235_v8 = vor.u32 %v2682_v0, %v2232_v1  ;;  %v2670_v36 = vld [vmem:[#allocation6 + $0x104] sm:$0xf]  ;;  %v2174_v38 = vld [vmem:[#allocation6 + $0xe8] sm:$0xf]  ;;  %v2183_v45 = vor.u32 %v2672_v32, %v2182_v31 }
  0x4f   :  { %546 = vmatpush.bf16.msrb.mxu1 %v1935_v11  ;;  %v2088_v11 = vld [vmem:[#allocation6 + $0x50] sm:$0xf0]  ;;  %v2669_v39 = vld [vmem:[#allocation6 + $0xf4] sm:$0xf0]  ;;  %v2667_v43 = vld [vmem:[#allocation6 + $0xec] sm:$0xf]  ;;  %v2187_v49 = vor.u32 %v2670_v36, %v2184_v37 }
  0x50   :  { %560 = vmatpush.bf16.msrb.mxu2 %v1811_v12  ;;  %v2678_v12 = vld [vmem:[#allocation6 + $0x144] sm:$0xf]  ;;  %v2176_v44 = vld [vmem:[#allocation6 + $0xf8] sm:$0xf0]  ;;  %v2699_v47 = vld [vmem:[#allocation6 + $0x1ec] sm:$0xf]  ;;  %v2175_v50 = vor.u32 %v2669_v39, %v2174_v38 }
  0x51   :  { %574 = vmatpush.bf16.msrb.mxu3 %v1939_v15  ;;  %533 = vmatmul.bf16.vlgmr.msrb.gmra.mxu0 %v2968_v51  ;;  %v2215_v15 = vor.u32 %v2680_v9, %v2214_v7  ;;  %v2219_v20 = vor.u32 %v2678_v12, %v2216_v13  ;;  %v2304_v48 = vld [vmem:[#allocation6 + $0x1f8] sm:$0xf0]  ;;  %v2286_v57 = vld [vmem:[#allocation6 + $0x1c8] sm:$0xf]  ;;  %v2697_v59 = vld [vmem:[#allocation6 + $0x1d4] sm:$0xf0] }
  0x52   :  { %965 = vmatpush.bf16.msra.mxu0 %v2167_v16  ;;  %547 = vmatmul.bf16.vlgmr.msrb.gmra.mxu1 %v2970_v55  ;;  %v2091_v16 = vor.u32 %v2646_v10, %v2088_v11  ;;  %v2307_v58 = vor.u32 %v2699_v47, %v2304_v48  ;;  %v2160_v61 = vld [vmem:[#allocation6 + $0xd8] sm:$0xf0]  ;;  %v2695_v62 = vld [vmem:[#allocation6 + $0x1cc] sm:$0xf]  ;;  %v2287_v1 = vor.u32 %v2697_v59, %v2286_v57  ;;  %v2270_v5 = vld [vmem:[#allocation6 + $0x1a8] sm:$0xf] }
  0x53   :  { %979 = vmatpush.bf16.msra.mxu1 %v2295_v17  ;;  %561 = vmatmul.bf16.vlgmr.msrb.gmra.mxu2 %v2968_v51  ;;  %v2070_v17 = vld [vmem:[#allocation6 + $0x20] sm:$0xf]  ;;  %v2288_v63 = vld [vmem:[#allocation6 + $0x1d8] sm:$0xf0]  ;;  %v2693_v7 = vld [vmem:[#allocation6 + $0x1b4] sm:$0xf0] }
  0x54   :  { %993 = vmatpush.bf16.msra.mxu2 %v2171_v18  ;;  %575 = vmatmul.bf16.vlgmr.msrb.gmra.mxu3 %v2970_v55  ;;  %v2644_v18 = vld [vmem:[#allocation6 + $0x2c] sm:$0xf0]  ;;  %v2291_v6 = vor.u32 %v2695_v62, %v2288_v63  ;;  %v2144_v9 = vld [vmem:[#allocation6 + $0xb8] sm:$0xf0]  ;;  %v2691_v10 = vld [vmem:[#allocation6 + $0x1ac] sm:$0xf]  ;;  %v2271_v13 = vor.u32 %v2693_v7, %v2270_v5 }
  0x55   :  { %1007 = vmatpush.bf16.msra.mxu3 %v2299_v22  ;;  %v2642_v22 = vld [vmem:[#allocation6 + $0x24] sm:$0xf]  ;;  %v2071_v26 = vor.u32 %v2644_v18, %v2070_v17  ;;  %v2272_v11 = vld [vmem:[#allocation6 + $0x1b8] sm:$0xf0]  ;;  %v2254_v17 = vld [vmem:[#allocation6 + $0x188] sm:$0xf] }
  0x56   :  { %966 = vmatpush.bf16.msra.mxu0 %v2151_v28  ;;  %v2640_v28 = vld [vmem:[#allocation6 + $0xc] sm:$0xf0]  ;;  %v2275_v18 = vor.u32 %v2691_v10, %v2272_v11  ;;  %v2685_v31 = vld [vmem:[#allocation6 + $0x174] sm:$0xf0]  ;;  %v2651_v32 = vld [vmem:[#allocation6 + $0x6c] sm:$0xf] }
  0x57   :  { %980 = vmatpush.bf16.msra.mxu1 %v2279_v29  ;;  %v2199_v29 = vor.u32 %v2676_v21, %v2198_v19  ;;  %v2689_v19 = vld [vmem:[#allocation6 + $0x194] sm:$0xf0]  ;;  %v2128_v21 = vld [vmem:[#allocation6 + $0x98] sm:$0xf0]  ;;  %v2094_v39 = vld [vmem:[#allocation6 + $0x48] sm:$0xf] }
  0x58   :  { %994 = vmatpush.bf16.msra.mxu2 %v2155_v30  ;;  %v2075_v30 = vor.u32 %v2642_v22, %v2072_v23  ;;  %v2687_v22 = vld [vmem:[#allocation6 + $0x18c] sm:$0xf]  ;;  %v2256_v23 = vld [vmem:[#allocation6 + $0x198] sm:$0xf0]  ;;  %v2677_v57 = vld [vmem:[#allocation6 + $0x134] sm:$0xf0] }
  0x59   :  { %1008 = vmatpush.bf16.msra.mxu3 %v2283_v34  ;;  %v2203_v34 = vor.u32 %v2674_v24, %v2200_v25  ;;  %v2255_v25 = vor.u32 %v2689_v19, %v2254_v17  ;;  %v2224_v47 = vld [vmem:[#allocation6 + $0x158] sm:$0xf0]  ;;  %v2673_v5 = vld [vmem:[#allocation6 + $0x114] sm:$0xf0]  ;;  %v2366_v17 = vld [vmem:[#allocation8 + $0x60] sm:$0xf] }
  0x5a   :  { %967 = vmatpush.bf16.msra.mxu0 %v2135_v40  ;;  %v2302_v40 = vld [vmem:[#allocation6 + $0x1e8] sm:$0xf]  ;;  %v2080_v59 = vld [vmem:[#allocation6 + $0x38] sm:$0xf0]  ;;  %s2915_s0 = smov [#allocation9]   ;;  %s1774_s16 = sshll.u32 %s3265_s4, 4  ;;  %s1775_s16 = int_to_ptr.hbm [resolvable:$true] %s1774_s16 }
  0x5b   :  { %981 = vmatpush.bf16.msra.mxu1 %v2263_v41  ;;  %v2055_v41 = vor.u32 %v2640_v28, %v2054_v27  ;;  %v2110_v27 = vld [vmem:[#allocation6 + $0x68] sm:$0xf]  ;;  %v2653_v28 = vld [vmem:[#allocation6 + $0x74] sm:$0xf0]  ;;  %v2064_v7 = vld [vmem:[#allocation6 + $0x18] sm:$0xf0] }
  0x5c   :  { %995 = vmatpush.bf16.msra.mxu2 %v2139_v42  ;;  %v2701_v42 = vld [vmem:[#allocation6 + $0x1f4] sm:$0xf0]  ;;  %v2111_v36 = vor.u32 %v2653_v28, %v2110_v27  ;;  %v2731_v28 = vld [vmem:[#allocation8 + $0xe4] sm:$0xf0]  ;;  %s1772_s13 = sshll.u32 %s2915_s0, 4  ;;  %s1773_s13 = int_to_ptr.vmem [resolvable:$true] %s1772_s13 }
  0x5d   :  { %1009 = vmatpush.bf16.msra.mxu3 %v2267_v46  ;;  %v2059_v46 = vor.u32 %v2638_v33, %v2056_v35  ;;  %v2303_v52 = vor.u32 %v2701_v42, %v2302_v40  ;;  %v2112_v33 = vld [vmem:[#allocation6 + $0x78] sm:$0xf0]  ;;  %v2649_v40 = vld [vmem:[#allocation6 + $0x54] sm:$0xf0] }
  0x5e   :  { %968 = vmatpush.bf16.msra.mxu0 %v2119_v53  ;;  %v2179_v53 = vor.u32 %v2667_v43, %v2176_v44  ;;  %v2240_v35 = vld [vmem:[#allocation6 + $0x178] sm:$0xf0]  ;;  %v2115_v38 = vor.u32 %v2651_v32, %v2112_v33  ;;  %v2681_v43 = vld [vmem:[#allocation6 + $0x154] sm:$0xf0]  ;;  %v2647_v44 = vld [vmem:[#allocation6 + $0x4c] sm:$0xf]  ;;  %v2095_v48 = vor.u32 %v2649_v40, %v2094_v39 }
  0x5f   :  { %982 = vmatpush.bf16.msra.mxu1 %v2247_v54  ;;  %v2158_v54 = vld [vmem:[#allocation6 + $0xc8] sm:$0xf]  ;;  %v2342_v40 = vld [vmem:[#allocation8 + $0x30] sm:$0xf] }
  0x60   :  { %996 = vmatpush.bf16.msra.mxu2 %v2123_v56  ;;  %v2665_v56 = vld [vmem:[#allocation6 + $0xd4] sm:$0xf0] }
  0x61   :  { %1010 = vmatpush.bf16.msra.mxu3 %v2251_v60  ;;  %v2663_v60 = vld [vmem:[#allocation6 + $0xcc] sm:$0xf]  ;;  %v2159_v0 = vor.u32 %v2665_v56, %v2158_v54  ;;  %v2206_v54 = vld [vmem:[#allocation6 + $0x128] sm:$0xf] }
  0x62   :  { %969 = vmatpush.bf16.msra.mxu0 %v2103_v2  ;;  %v2163_v2 = vor.u32 %v2663_v60, %v2160_v61  ;;  %v2675_v60 = vld [vmem:[#allocation6 + $0x12c] sm:$0xf]  ;;  %v2208_v61 = vld [vmem:[#allocation6 + $0x138] sm:$0xf0]  ;;  %v2207_v63 = vor.u32 %v2677_v57, %v2206_v54  ;;  %v2406_v54 = vld [vmem:[#allocation8 + $0xb0] sm:$0xf] }
  0x63   :  { %983 = vmatpush.bf16.msra.mxu1 %v2231_v3  ;;  %v2142_v3 = vld [vmem:[#allocation6 + $0xa8] sm:$0xf] }
  0x64   :  { %997 = vmatpush.bf16.msra.mxu2 %v2107_v4  ;;  %v2661_v4 = vld [vmem:[#allocation6 + $0xb4] sm:$0xf0] }
  0x65   :  { %1011 = vmatpush.bf16.msra.mxu3 %v2235_v8  ;;  %v2659_v8 = vld [vmem:[#allocation6 + $0xac] sm:$0xf]  ;;  %v2143_v12 = vor.u32 %v2661_v4, %v2142_v3  ;;  %v2190_v3 = vld [vmem:[#allocation6 + $0x108] sm:$0xf]  ;;  %v2211_v4 = vor.u32 %v2675_v60, %v2208_v61  ;;  %v2326_v61 = vld [vmem:[#allocation8 + $0x10] sm:$0xf] }
  0x66   :  { %970 = vmatpush.bf16.msra.mxu0 %v2087_v14  ;;  %v2147_v14 = vor.u32 %v2659_v8, %v2144_v9  ;;  %v2671_v8 = vld [vmem:[#allocation6 + $0x10c] sm:$0xf]  ;;  %v2192_v9 = vld [vmem:[#allocation6 + $0x118] sm:$0xf0]  ;;  %v2191_v11 = vor.u32 %v2673_v5, %v2190_v3  ;;  %v2703_v5 = vld [vmem:[#allocation8 + $0x4] sm:$0xf0] }
  0x67   :  { %984 = vmatpush.bf16.msra.mxu1 %v2215_v15  ;;  %v2126_v15 = vld [vmem:[#allocation6 + $0x88] sm:$0xf] }
  0x68   :  { %998 = vmatpush.bf16.msra.mxu2 %v2091_v16  ;;  %v2657_v16 = vld [vmem:[#allocation6 + $0x94] sm:$0xf0] }
  0x69   :  { %1012 = vmatpush.bf16.msra.mxu3 %v2219_v20  ;;  %v2655_v20 = vld [vmem:[#allocation6 + $0x8c] sm:$0xf]  ;;  %v2127_v24 = vor.u32 %v2657_v16, %v2126_v15  ;;  %v2717_v15 = vld [vmem:[#allocation8 + $0x74] sm:$0xf0] }
  0x6a   :  { %971 = vmatpush.bf16.msra.mxu0 %v2071_v26  ;;  %v2131_v26 = vor.u32 %v2655_v20, %v2128_v21 }
  0x6b   :  { %985 = vmatpush.bf16.msra.mxu1 %v2199_v29  ;;  %v2238_v29 = vld [vmem:[#allocation6 + $0x168] sm:$0xf] }
  0x6c   :  { %999 = vmatpush.bf16.msra.mxu2 %v2075_v30  ;;  %v2259_v30 = vor.u32 %v2687_v22, %v2256_v23  ;;  %v2239_v37 = vor.u32 %v2685_v31, %v2238_v29  ;;  %v2438_v22 = vld [vmem:[#allocation8 + $0xf0] sm:$0xf]  ;;  %v2733_v23 = vld [vmem:[#allocation8 + $0xf4] sm:$0xf0]  ;;  %v2350_v29 = vld [vmem:[#allocation8 + $0x40] sm:$0xf] }
  0x6d   :  { %1013 = vmatpush.bf16.msra.mxu3 %v2203_v34  ;;  %v2683_v34 = vld [vmem:[#allocation6 + $0x16c] sm:$0xf] }
  0x6e   :  { %972 = vmatpush.bf16.msra.mxu0 %v2055_v41  ;;  %v2222_v41 = vld [vmem:[#allocation6 + $0x148] sm:$0xf]  ;;  %v2243_v42 = vor.u32 %v2683_v34, %v2240_v35  ;;  %v2422_v34 = vld [vmem:[#allocation8 + $0xd0] sm:$0xf]  ;;  %v2729_v35 = vld [vmem:[#allocation8 + $0xd4] sm:$0xf0] }
  0x6f   :  { %986 = vmatpush.bf16.msra.mxu1 %v2183_v45  ;;  %v2096_v45 = vld [vmem:[#allocation6 + $0x58] sm:$0xf0] }
  0x70   :  { %1000 = vmatpush.bf16.msra.mxu2 %v2059_v46  ;;  %v2679_v46 = vld [vmem:[#allocation6 + $0x14c] sm:$0xf] }
  0x71   :  { %1014 = vmatpush.bf16.msra.mxu3 %v2187_v49  ;;  %973 = vmatmul.bf16.vlgmr.msra.gmra.mxu0 %v2968_v51  ;;  %v2223_v49 = vor.u32 %v2681_v43, %v2222_v41  ;;  %v2227_v56 = vor.u32 %v2679_v46, %v2224_v47  ;;  %v2709_v41 = vld [vmem:[#allocation8 + $0x34] sm:$0xf0] }
  0x72   :  { %1021 = vmatpush.bf16.msrb.mxu0 %v2175_v50  ;;  %987 = vmatmul.bf16.vlgmr.msra.gmra.mxu1 %v2970_v55  ;;  %v2099_v50 = vor.u32 %v2647_v44, %v2096_v45  ;;  %v2343_v43 = vor.u32 %v2709_v41, %v2342_v40  ;;  %v2414_v44 = vld [vmem:[#allocation8 + $0xc0] sm:$0xf]  ;;  %v2727_v45 = vld [vmem:[#allocation8 + $0xc4] sm:$0xf0]  ;;  %v2712_v41 = vld [vmem:[#allocation8 + $0x54] sm:$0xf] }
  0x73   :  { %1035 = vmatpush.bf16.msrb.mxu1 %v2303_v52  ;;  %1001 = vmatmul.bf16.vlgmr.msra.gmra.mxu2 %v2968_v51  ;;  %v2078_v52 = vld [vmem:[#allocation6 + $0x28] sm:$0xf]  ;;  %v2415_v47 = vor.u32 %v2727_v45, %v2414_v44  ;;  %v2558_v44 = vld [vmem:[#allocation8 + $0x1e0] sm:$0xf] }
  0x74   :  { %1049 = vmatpush.bf16.msrb.mxu2 %v2179_v53  ;;  %1015 = vmatmul.bf16.vlgmr.msra.gmra.mxu3 %v2970_v55  ;;  %v2645_v53 = vld [vmem:[#allocation6 + $0x34] sm:$0xf0] }
  0x75   :  { %1063 = vmatpush.bf16.msrb.mxu3 %v2307_v58  ;;  %v2643_v58 = vld [vmem:[#allocation6 + $0x2c] sm:$0xf]  ;;  %v2079_v62 = vor.u32 %v2645_v53, %v2078_v52 }
  0x76   :  { %1022 = vmatpush.bf16.msrb.mxu0 %v2159_v0  ;;  %v2083_v0 = vor.u32 %v2643_v58, %v2080_v59 }
  0x77   :  { %1036 = vmatpush.bf16.msrb.mxu1 %v2287_v1  ;;  %v2062_v1 = vld [vmem:[#allocation6 + $0x8] sm:$0xf] }
  0x78   :  { %1050 = vmatpush.bf16.msrb.mxu2 %v2163_v2  ;;  %v2641_v2 = vld [vmem:[#allocation6 + $0x14] sm:$0xf0] }
  0x79   :  { %1064 = vmatpush.bf16.msrb.mxu3 %v2291_v6  ;;  %v2639_v6 = vld [vmem:[#allocation6 + $0xc] sm:$0xf]  ;;  %v2063_v10 = vor.u32 %v2641_v2, %v2062_v1  ;;  %v2723_v2 = vld [vmem:[#allocation8 + $0xa4] sm:$0xf0] }
  0x7a   :  { %1023 = vmatpush.bf16.msrb.mxu0 %v2143_v12  ;;  %v2067_v12 = vor.u32 %v2639_v6, %v2064_v7  ;;  %v2502_v7 = vld [vmem:[#allocation8 + $0x170] sm:$0xf] }
  0x7b   :  { %1037 = vmatpush.bf16.msrb.mxu1 %v2271_v13  ;;  %v2195_v13 = vor.u32 %v2671_v8, %v2192_v9  ;;  %v2749_v8 = vld [vmem:[#allocation8 + $0x174] sm:$0xf0]  ;;  %v2716_v9 = vld [vmem:[#allocation8 + $0x74] sm:$0xf] }
  0x7c   :  { %1051 = vmatpush.bf16.msrb.mxu2 %v2147_v14  ;;  %v2374_v14 = vld [vmem:[#allocation8 + $0x70] sm:$0xf] }
  0x7d   :  { %1065 = vmatpush.bf16.msrb.mxu3 %v2275_v18  ;;  %v2375_v16 = vor.u32 %v2717_v15, %v2374_v14  ;;  %v2715_v18 = vld [vmem:[#allocation8 + $0x64] sm:$0xf0] }
  0x7e   :  { %1024 = vmatpush.bf16.msrb.mxu0 %v2127_v24  ;;  %v2367_v21 = vor.u32 %v2715_v18, %v2366_v17  ;;  %v2439_v24 = vor.u32 %v2733_v23, %v2438_v22  ;;  %v2721_v17 = vld [vmem:[#allocation8 + $0x94] sm:$0xf0]  ;;  %v2714_v22 = vld [vmem:[#allocation8 + $0x64] sm:$0xf] }
  0x7f   :  { %1038 = vmatpush.bf16.msrb.mxu1 %v2255_v25  ;;  %v2358_v25 = vld [vmem:[#allocation8 + $0x50] sm:$0xf] }
  0x80   :  { %1052 = vmatpush.bf16.msrb.mxu2 %v2131_v26  ;;  %v2713_v26 = vld [vmem:[#allocation8 + $0x54] sm:$0xf0] }
  0x81   :  { %1066 = vmatpush.bf16.msrb.mxu3 %v2259_v30  ;;  %v2359_v27 = vor.u32 %v2713_v26, %v2358_v25  ;;  %v2711_v30 = vld [vmem:[#allocation8 + $0x44] sm:$0xf0]  ;;  %v2368_v26 = vld [vmem:[#allocation8 + $0x68] sm:$0xf0] }
  0x82   :  { %1025 = vmatpush.bf16.msrb.mxu0 %v2111_v36  ;;  %v2351_v31 = vor.u32 %v2711_v30, %v2350_v29  ;;  %v2371_v29 = vor.u32 %v2714_v22, %v2368_v26  ;;  %v2719_v30 = vld [vmem:[#allocation8 + $0x84] sm:$0xf0]  ;;  %v2726_v26 = vld [vmem:[#allocation8 + $0xc4] sm:$0xf] }
  0x83   :  { %1039 = vmatpush.bf16.msrb.mxu1 %v2239_v37 }
  0x84   :  { %1053 = vmatpush.bf16.msrb.mxu2 %v2115_v38  ;;  %v2423_v38 = vor.u32 %v2729_v35, %v2422_v34  ;;  %v2732_v34 = vld [vmem:[#allocation8 + $0xf4] sm:$0xf] }
  0x85   :  { %1067 = vmatpush.bf16.msrb.mxu3 %v2243_v42 }
  0x86   :  { %1026 = vmatpush.bf16.msrb.mxu0 %v2095_v48 }
  0x87   :  { %1040 = vmatpush.bf16.msrb.mxu1 %v2223_v49  ;;  %v2334_v49 = vld [vmem:[#allocation8 + $0x20] sm:$0xf] }
  0x88   :  { %1054 = vmatpush.bf16.msrb.mxu2 %v2099_v50  ;;  %v2707_v50 = vld [vmem:[#allocation8 + $0x24] sm:$0xf0] }
  0x89   :  { %1068 = vmatpush.bf16.msrb.mxu3 %v2227_v56  ;;  %v2335_v52 = vor.u32 %v2707_v50, %v2334_v49  ;;  %v2725_v56 = vld [vmem:[#allocation8 + $0xb4] sm:$0xf0]  ;;  %v2730_v49 = vld [vmem:[#allocation8 + $0xe4] sm:$0xf] }
  0x8a   :  { %1027 = vmatpush.bf16.msrb.mxu0 %v2079_v62  ;;  %v2407_v58 = vor.u32 %v2725_v56, %v2406_v54  ;;  %v2705_v62 = vld [vmem:[#allocation8 + $0x14] sm:$0xf0]  ;;  %v2743_v56 = vld [vmem:[#allocation8 + $0x144] sm:$0xf0] }
  0x8b   :  { %1041 = vmatpush.bf16.msrb.mxu1 %v2207_v63  ;;  %v2327_v63 = vor.u32 %v2705_v62, %v2326_v61 }
  0x8c   :  { %1055 = vmatpush.bf16.msrb.mxu2 %v2083_v0  ;;  %v2398_v0 = vld [vmem:[#allocation8 + $0xa0] sm:$0xf] }
  0x8d   :  { %1069 = vmatpush.bf16.msrb.mxu3 %v2211_v4  ;;  %v2399_v3 = vor.u32 %v2723_v2, %v2398_v0  ;;  %v2318_v4 = vld [vmem:[#allocation8] sm:$0xf]  ;;  %v2550_v0 = vld [vmem:[#allocation8 + $0x1d0] sm:$0xf]  ;;  %v2761_v2 = vld [vmem:[#allocation8 + $0x1d4] sm:$0xf0] }
  0x8e   :  { %1028 = vmatpush.bf16.msrb.mxu0 %v2063_v10  ;;  %v2319_v6 = vor.u32 %v2703_v5, %v2318_v4  ;;  %v2551_v5 = vor.u32 %v2761_v2, %v2550_v0  ;;  %v2328_v0 = vld [vmem:[#allocation8 + $0x18] sm:$0xf0]  ;;  %v2526_v2 = vld [vmem:[#allocation8 + $0x1a0] sm:$0xf] }
  0x8f   :  { %1042 = vmatpush.bf16.msrb.mxu1 %v2191_v11  ;;  %v2503_v11 = vor.u32 %v2749_v8, %v2502_v7  ;;  %v2424_v7 = vld [vmem:[#allocation8 + $0xd8] sm:$0xf0] }
  0x90   :  { %1056 = vmatpush.bf16.msrb.mxu2 %v2067_v12  ;;  %v2376_v12 = vld [vmem:[#allocation8 + $0x78] sm:$0xf0] }
  0x91   :  { %1070 = vmatpush.bf16.msrb.mxu3 %v2195_v13  ;;  %1029 = vmatmul.bf16.vlgmr.msrb.gmra.mxu0 %v2968_v51  ;;  %v2379_v14 = vor.u32 %v2716_v9, %v2376_v12  ;;  %v2470_v9 = vld [vmem:[#allocation8 + $0x130] sm:$0xf] }
  0x92   :  { %1043 = vmatmul.bf16.vlgmr.msrb.gmra.mxu1 %v2970_v55  ;;  %1637 = vmatpush.bf16.msra.mxu0 %v2375_v16  ;;  %v2390_v16 = vld [vmem:[#allocation8 + $0x90] sm:$0xf] }
  0x93   :  { %1057 = vmatmul.bf16.vlgmr.msrb.gmra.mxu2 %v2968_v51  ;;  %1651 = vmatpush.bf16.msra.mxu1 %v2439_v24  ;;  %v2430_v51 = vld [vmem:[#allocation8 + $0xe0] sm:$0xf]  ;;  %v2391_v24 = vor.u32 %v2721_v17, %v2390_v16  ;;  %v2708_v16 = vld [vmem:[#allocation8 + $0x34] sm:$0xf]  ;;  %v2344_v17 = vld [vmem:[#allocation8 + $0x38] sm:$0xf0] }
  0x94   :  { %1071 = vmatmul.bf16.vlgmr.msrb.gmra.mxu3 %v2970_v55  ;;  %v2431_v55 = vor.u32 %v2731_v28, %v2430_v51  ;;  %1665 = vmatpush.bf16.msra.mxu2 %v2503_v11 }
  0x96   :  { %1638 = vmatpush.bf16.msra.mxu0 %v2367_v21  ;;  %v2747_v21 = vld [vmem:[#allocation8 + $0x164] sm:$0xf0] }
  0x97   :  { %1652 = vmatpush.bf16.msra.mxu1 %v2431_v55 }
  0x9a   :  { %1639 = vmatpush.bf16.msra.mxu0 %v2359_v27  ;;  %v2382_v27 = vld [vmem:[#allocation8 + $0x80] sm:$0xf] }
  0x9b   :  { %1653 = vmatpush.bf16.msra.mxu1 %v2423_v38  ;;  %v2745_v38 = vld [vmem:[#allocation8 + $0x154] sm:$0xf0] }
  0x9e   :  { %1640 = vmatpush.bf16.msra.mxu0 %v2351_v31  ;;  %v2383_v31 = vor.u32 %v2719_v30, %v2382_v27  ;;  %v2416_v27 = vld [vmem:[#allocation8 + $0xc8] sm:$0xf0] }
  0x9f   :  { %1654 = vmatpush.bf16.msra.mxu1 %v2415_v47 }
  0xa2   :  { %1641 = vmatpush.bf16.msra.mxu0 %v2343_v43  ;;  %v2360_v43 = vld [vmem:[#allocation8 + $0x58] sm:$0xf0] }
  0xa3   :  { %1655 = vmatpush.bf16.msra.mxu1 %v2407_v58  ;;  %v2363_v47 = vor.u32 %v2712_v41, %v2360_v43  ;;  %v2352_v58 = vld [vmem:[#allocation8 + $0x48] sm:$0xf0]  ;;  %v2534_v41 = vld [vmem:[#allocation8 + $0x1b0] sm:$0xf]  ;;  %v2757_v43 = vld [vmem:[#allocation8 + $0x1b4] sm:$0xf0] }
  0xa6   :  { %1642 = vmatpush.bf16.msra.mxu0 %v2335_v52  ;;  %v2432_v52 = vld [vmem:[#allocation8 + $0xe8] sm:$0xf0] }
  0xa7   :  { %1656 = vmatpush.bf16.msra.mxu1 %v2399_v3  ;;  %v2435_v62 = vor.u32 %v2730_v49, %v2432_v52  ;;  %v2408_v49 = vld [vmem:[#allocation8 + $0xb8] sm:$0xf0] }
  0xaa   :  { %1643 = vmatpush.bf16.msra.mxu0 %v2327_v63 }
  0xab   :  { %1657 = vmatpush.bf16.msra.mxu1 %v2391_v24  ;;  %v2347_v24 = vor.u32 %v2708_v16, %v2344_v17  ;;  %v2400_v16 = vld [vmem:[#allocation8 + $0xa8] sm:$0xf0]  ;;  %v2446_v17 = vld [vmem:[#allocation8 + $0x100] sm:$0xf] }
  0xae   :  { %v478_v19 = vpop.f32.mrf.mxu0  ;;  %1644 = vmatpush.bf16.msra.mxu0 %v2319_v6  ;;  %v2728_v6 = vld [vmem:[#allocation8 + $0xd4] sm:$0xf] }
  0xaf   :  { %v492_v20 = vpop.f32.mrf.mxu1  ;;  %1658 = vmatpush.bf16.msra.mxu1 %v2383_v31  ;;  %v2739_v31 = vld [vmem:[#allocation8 + $0x124] sm:$0xf0] }
  0xb0   :  { %v2988_v39 = vadd.f32 %v492_v20, %v478_v19  ;;  %v2494_v20 = vld [vmem:[#allocation8 + $0x160] sm:$0xf] }
  0xb1   :  { %v2495_v25 = vor.u32 %v2747_v21, %v2494_v20  ;;  %v2542_v20 = vld [vmem:[#allocation8 + $0x1c0] sm:$0xf]  ;;  %v2759_v21 = vld [vmem:[#allocation8 + $0x1c4] sm:$0xf0] }
  0xb2   :  { %v2308_v48 = vmul.f32 -1.442695, %v2988_v39  ;;  %1693 = vmatpush.bf16.msrb.mxu0 %v2379_v14  ;;  %v2427_v14 = vor.u32 %v2728_v6, %v2424_v7  ;;  %v2755_v7 = vld [vmem:[#allocation8 + $0x1a4] sm:$0xf0] }
  0xb3   :  { %1666 = vmatpush.bf16.msra.mxu2 %v2495_v25  ;;  %v2543_v25 = vor.u32 %v2759_v21, %v2542_v20 }
  0xb4   :  { %2774 = vpow2.f32 %v2308_v48  ;;  %v2763_v48 = vld [vmem:[#allocation8 + $0x1e4] sm:$0xf0] }
  0xb5   :  { %v2559_v54 = vor.u32 %v2763_v48, %v2558_v44  ;;  %v2724_v48 = vld [vmem:[#allocation8 + $0xb4] sm:$0xf] }
  0xb6   :  { %v506_v32 = vpop.f32.mrf.mxu2  ;;  %v480_v36 = vpop.f32.mrf.mxu0  ;;  %1694 = vmatpush.bf16.msrb.mxu0 %v2371_v29 }
  0xb7   :  { %v520_v33 = vpop.f32.mrf.mxu3  ;;  %v494_v37 = vpop.f32.mrf.mxu1 }
  0xb8   :  { %v2990_v42 = vadd.f32 %v494_v37, %v480_v36  ;;  %v2992_v46 = vadd.f32 %v520_v33, %v506_v32  ;;  %v2566_v32 = vld [vmem:[#allocation8 + $0x1f0] sm:$0xf]  ;;  %v2765_v33 = vld [vmem:[#allocation8 + $0x1f4] sm:$0xf0]  ;;  %v2440_v36 = vld [vmem:[#allocation8 + $0xf8] sm:$0xf0] }
  0xb9   :  { %v2567_v35 = vor.u32 %v2765_v33, %v2566_v32  ;;  %v2486_v37 = vld [vmem:[#allocation8 + $0x150] sm:$0xf]  ;;  %v2443_v40 = vor.u32 %v2732_v34, %v2440_v36  ;;  %v2419_v34 = vor.u32 %v2726_v26, %v2416_v27  ;;  %v2706_v36 = vld [vmem:[#allocation8 + $0x24] sm:$0xf] }
  0xba   :  { %v2312_v53 = vmul.f32 -1.442695, %v2990_v42  ;;  %v2309_v57 = vmul.f32 -1.442695, %v2992_v46  ;;  %v2775_v10 = vpop.eup %2774  ;;  %v2487_v45 = vor.u32 %v2745_v38, %v2486_v37  ;;  %1695 = vmatpush.bf16.msrb.mxu0 %v2363_v47  ;;  %v2336_v37 = vld [vmem:[#allocation8 + $0x28] sm:$0xf0]  ;;  %v2535_v47 = vor.u32 %v2757_v43, %v2534_v41 }
  0xbb   :  { %v3000_v19 = vadd.f32 1.0, %v2775_v10  ;;  %1679 = vmatpush.bf16.msra.mxu3 %v2567_v35  ;;  %1707 = vmatpush.bf16.msrb.mxu1 %v2443_v40  ;;  %v2741_v10 = vld [vmem:[#allocation8 + $0x134] sm:$0xf0]  ;;  %v2339_v40 = vor.u32 %v2706_v36, %v2336_v37 }
  0xbc   :  { %2776 = vpow2.f32 %v2312_v53  ;;  %v2478_v53 = vld [vmem:[#allocation8 + $0x140] sm:$0xf]  ;;  %1667 = vmatpush.bf16.msra.mxu2 %v2487_v45  ;;  %v2753_v36 = vld [vmem:[#allocation8 + $0x194] sm:$0xf0] }
  0xbd   :  { %2778 = vpow2.f32 %v2309_v57  ;;  %v2710_v57 = vld [vmem:[#allocation8 + $0x44] sm:$0xf]  ;;  %v2479_v63 = vor.u32 %v2743_v56, %v2478_v53  ;;  %v1118_v30 = vand.u32 2147483647, %v3000_v19  ;;  %v1120_v33 = vand.u32 2147483648, %v3000_v19 }
  0xbe   :  { %v508_v59 = vpop.f32.mrf.mxu2  ;;  %v2355_v4 = vor.u32 %v2710_v57, %v2352_v58  ;;  %v2737_v56 = vld [vmem:[#allocation8 + $0x114] sm:$0xf0]  ;;  %vm1114_vm0 = vweird.f32 %v3000_v19 }
  0xbf   :  { %v522_v60 = vpop.f32.mrf.mxu3  ;;  %1680 = vmatpush.bf16.msra.mxu3 %v2559_v54  ;;  %1708 = vmatpush.bf16.msrb.mxu1 %v2435_v62  ;;  %v2454_v54 = vld [vmem:[#allocation8 + $0x110] sm:$0xf]  ;;  %v2411_v62 = vor.u32 %v2724_v48, %v2408_v49  ;;  %vm3059_vm1 = vcmp.eq.f32.partialorder %v1118_v30, 8.507059e+37  ;;  %v2320_v30 = vld [vmem:[#allocation8 + $0x8] sm:$0xf0] }
  0xc0   :  { %v2997_v1 = vadd.f32 %v522_v60, %v508_v59  ;;  %1668 = vmatpush.bf16.msra.mxu2 %v2479_v63  ;;  %1696 = vmatpush.bf16.msrb.mxu0 %v2355_v4  ;;  %v2704_v63 = vld [vmem:[#allocation8 + $0x14] sm:$0xf]  ;;  %v2392_v49 = vld [vmem:[#allocation8 + $0x98] sm:$0xf0] }
  0xc2   :  { %v2313_v13 = vmul.f32 -1.442695, %v2997_v1  ;;  %v2777_v15 = vpop.eup %2776 }
  0xc3   :  { %v2779_v18 = vpop.eup %2778  ;;  %v3002_v23 = vadd.f32 1.0, %v2777_v15  ;;  %v2471_v15 = vor.u32 %v2741_v10, %v2470_v9  ;;  %1681 = vmatpush.bf16.msra.mxu3 %v2551_v5  ;;  %1709 = vmatpush.bf16.msrb.mxu1 %v2427_v14  ;;  %v3052_v5 = vor.u32 1.1754944e-38, %v1120_v33  ;;  %v2455_v10 = vor.u32 %v2737_v56, %v2454_v54  ;;  %v2760_v54 = vld [vmem:[#allocation8 + $0x1d4] sm:$0xf]  ;;  %v2552_v56 = vld [vmem:[#allocation8 + $0x1d8] sm:$0xf0] }
  0xc4   :  { %2780 = vpow2.f32 %v2313_v13  ;;  %v3004_v51 = vadd.f32 1.0, %v2779_v18  ;;  %1697 = vmatpush.bf16.msrb.mxu0 %v2347_v24  ;;  %v2331_v14 = vor.u32 %v2704_v63, %v2328_v0  ;;  %v2735_v24 = vld [vmem:[#allocation8 + $0x104] sm:$0xf0]  ;;  %v2510_v0 = vld [vmem:[#allocation8 + $0x180] sm:$0xf] }
  0xc5   :  { %2782 = vrcp.f32 %v3000_v19  ;;  %1669 = vmatpush.bf16.msra.mxu2 %v2471_v15  ;;  %v1178_v6 = vand.u32 2147483647, %v3002_v23  ;;  %v2527_v15 = vor.u32 %v2755_v7, %v2526_v2  ;;  %vm1174_vm3 = vweird.f32 %v3002_v23 }
  0xc6   :  { %2784 = vrcp.f32 %v3002_v23  ;;  %v2447_v27 = vor.u32 %v2735_v24, %v2446_v17  ;;  %v1135_v41 = vand.u32 2147483648, %v3004_v51  ;;  %vm1129_vm6 = vweird.f32 %v3004_v51  ;;  %v2744_v17 = vld [vmem:[#allocation8 + $0x154] sm:$0xf]  ;;  %v2488_v24 = vld [vmem:[#allocation8 + $0x158] sm:$0xf0] }
  0xc7   :  { %2786 = vrcp.f32 %v3004_v51  ;;  %1682 = vmatpush.bf16.msra.mxu3 %v2543_v25  ;;  %1710 = vmatpush.bf16.msrb.mxu1 %v2419_v34  ;;  %v2702_v25 = vld [vmem:[#allocation8 + $0x4] sm:$0xf]  ;;  %vm3095_vm8 = vcmp.eq.f32.partialorder %v1178_v6, 8.507059e+37 }
  0xc8   :  { %1698 = vmatpush.bf16.msrb.mxu0 %v2339_v40  ;;  %v2323_v33 = vor.u32 %v2702_v25, %v2320_v30  ;;  %v1133_v40 = vand.u32 2147483647, %v3004_v51  ;;  %v2718_v6 = vld [vmem:[#allocation8 + $0x84] sm:$0xf]  ;;  %v2560_v30 = vld [vmem:[#allocation8 + $0x1e8] sm:$0xf0] }
  0xc9   :  { %v2756_v25 = vld [vmem:[#allocation8 + $0x1b4] sm:$0xf] }
  0xca   :  { %v2781_v50 = vpop.eup %2780  ;;  %vm3134_vm13 = vcmp.eq.f32.partialorder %v1133_v40, 8.507059e+37 }
  0xcb   :  { %v3010_v59 = vpop.eup %2782  ;;  %v3017_v3 = vadd.f32 1.0, %v2781_v50  ;;  %1683 = vmatpush.bf16.msra.mxu3 %v2535_v47  ;;  %1711 = vmatpush.bf16.msrb.mxu1 %v2411_v62 }
  0xcc   :  { %v3019_v8 = vpop.eup %2784  ;;  %v1110_v11 = vmul.f32 %v3010_v59, %v3000_v19  ;;  %vm1115_vm2 = vweird.f32 %v3010_v59  ;;  %1699 = vmatpush.bf16.msrb.mxu0 %v2331_v14  ;;  %v2746_v19 = vld [vmem:[#allocation8 + $0x164] sm:$0xf] }
  0xcd   :  { %v3028_v22 = vmul.f32 %v3019_v8, %v3002_v23  ;;  %2788 = vrcp.f32 %v3017_v3  ;;  %v3031_v29 = vpop.eup %2786  ;;  %vm1175_vm4 = vweird.f32 %v3019_v8  ;;  %vm3078_vm5 = vmor %vm1114_vm0, %vm1115_vm2  ;;  %vm1189_vm10 = vweird.f32 %v3017_v3 }
  0xce   :  { %v3006_v28 = vpop.f32.mrf.mxu0  ;;  %v1111_v32 = vsub.f32 1.0, %v1110_v11  ;;  %v3040_v44 = vmul.f32 %v3031_v29, %v3004_v51  ;;  %v2722_v11 = vld [vmem:[#allocation8 + $0xa4] sm:$0xf]  ;;  %vm3091_vm7 = vmor %vm1174_vm3, %vm1175_vm4  ;;  %vm1130_vm9 = vweird.f32 %v3031_v29  ;;  %v2555_v51 = vor.u32 %v2760_v54, %v2552_v56 }
  0xcf   :  { %v548_v55 = vpop.f32.mrf.mxu1  ;;  %v1171_v45 = vsub.f32 1.0, %v3028_v22  ;;  %v2403_v22 = vor.u32 %v2722_v11, %v2400_v16  ;;  %1684 = vmatpush.bf16.msra.mxu3 %v2527_v15  ;;  %v2764_v11 = vld [vmem:[#allocation8 + $0x1f4] sm:$0xf]  ;;  %v2568_v16 = vld [vmem:[#allocation8 + $0x1f8] sm:$0xf0]  ;;  %vm3123_vm12 = vmor %vm1129_vm6, %vm1130_vm9 }
  0xd0   :  { %v3024_v18 = vadd.f32 %v548_v55, %v3006_v28  ;;  %v2462_v55 = vld [vmem:[#allocation8 + $0x120] sm:$0xf]  ;;  %v1112_v4 = vmul.f32 %v3010_v59, %v1111_v32  ;;  %v1126_v9 = vsub.f32 1.0, %v3040_v44  ;;  %1700 = vmatpush.bf16.msrb.mxu0 %v2323_v33 }
  0xd1   :  { %v2463_v35 = vor.u32 %v2739_v31, %v2462_v55  ;;  %v1172_v20 = vmul.f32 %v3019_v8, %v1171_v45  ;;  %v2748_v55 = vld [vmem:[#allocation8 + $0x174] sm:$0xf]  ;;  %v2504_v31 = vld [vmem:[#allocation8 + $0x178] sm:$0xf0]  ;;  %1712 = vmatpush.bf16.msrb.mxu1 %v2403_v22  ;;  %v2571_v22 = vor.u32 %v2764_v11, %v2568_v16 }
  0xd2   :  { %v2310_v38 = vmul.f32 -1.442695, %v3024_v18  ;;  %v3069_v26 = vadd.f32 %v3010_v59, %v1112_v4  ;;  %v2507_v34 = vor.u32 %v2748_v55, %v2504_v31  ;;  %v2720_v45 = vld [vmem:[#allocation8 + $0x94] sm:$0xf]  ;;  %v2751_v4 = vld [vmem:[#allocation8 + $0x184] sm:$0xf0] }
  0xd3   :  { %v3044_v57 = vpop.eup %2788  ;;  %1670 = vmatpush.bf16.msra.mxu2 %v2463_v35  ;;  %v2518_v35 = vld [vmem:[#allocation8 + $0x190] sm:$0xf]  ;;  %v1173_v47 = vadd.f32 %v3019_v8, %v1172_v20  ;;  %v2511_v15 = vor.u32 %v2751_v4, %v2510_v0  ;;  %v2472_v0 = vld [vmem:[#allocation8 + $0x138] sm:$0xf0] }
  0xd4   :  { %2790 = vpow2.f32 %v2310_v38  ;;  %v2519_v44 = vor.u32 %v2753_v36, %v2518_v35  ;;  %v1117_v2 = vsel %vm3078_vm5, %v3010_v59, %v3069_v26  ;;  %vm1190_vm11 = vweird.f32 %v3044_v57  ;;  %v2528_v36 = vld [vmem:[#allocation8 + $0x1a8] sm:$0xf0] }
  0xd5   :  { %v1177_v59 = vsel %vm3091_vm7, %v3019_v8, %v1173_v47  ;;  %v1122_v8 = vsel %vm3059_vm1, %v3052_v5, %v1117_v2  ;;  %v2491_v26 = vor.u32 %v2744_v17, %v2488_v24  ;;  %vm3142_vm14 = vmor %vm1189_vm10, %vm1190_vm11  ;;  %v2738_v17 = vld [vmem:[#allocation8 + $0x124] sm:$0xf] }
  0xd6   :  { %v3013_v60 = vpop.f32.mrf.mxu2  ;;  %v536_v12 = vpop.f32.mrf.mxu0  ;;  %1685 = vmatpush.bf16.msra.mxu3 %v2519_v44  ;;  %v2742_v44 = vld [vmem:[#allocation8 + $0x144] sm:$0xf]  ;;  %v1229_v40 = vmul.f32 %v1122_v8, %v2988_v39 }
  0xd7   :  { %v3015_v61 = vpop.f32.mrf.mxu3  ;;  %v550_v13 = vpop.f32.mrf.mxu1  ;;  %1671 = vmatpush.bf16.msra.mxu2 %v2455_v10  ;;  %v2384_v10 = vld [vmem:[#allocation8 + $0x88] sm:$0xf0] }
  0xd8   :  { %v3034_v28 = vadd.f32 %v550_v13, %v536_v12  ;;  %v3049_v58 = vadd.f32 %v3015_v61, %v3013_v60  ;;  %v1180_v60 = vand.u32 2147483648, %v3002_v23  ;;  %v1185_v13 = vmul.f32 %v3044_v57, %v3017_v3 }
  0xd9   :  { %v1193_v12 = vand.u32 2147483647, %v3017_v3 }
  0xda   :  { %v2314_v50 = vmul.f32 -1.442695, %v3034_v28  ;;  %v2311_v21 = vmul.f32 -1.442695, %v3049_v58  ;;  %v2791_v37 = vpop.eup %2790  ;;  %v1186_v43 = vsub.f32 1.0, %v1185_v13  ;;  %v1181_v62 = vor.u32 1.1754944e-38, %v1180_v60  ;;  %1686 = vmatpush.bf16.msra.mxu3 %v2511_v15 }
  0xdb   :  { %1672 = vmatpush.bf16.msra.mxu2 %v2447_v27  ;;  %v3104_v23 = vadd.f32 1.0, %v2791_v37  ;;  %v1195_v13 = vand.u32 2147483648, %v3017_v3  ;;  %v2762_v27 = vld [vmem:[#allocation8 + $0x1e4] sm:$0xf]  ;;  %v1136_v3 = vor.u32 1.1754944e-38, %v1135_v41  ;;  %vm1194_vm15 = vcmp.eq.f32.partialorder %v1193_v12, 8.507059e+37 }
  0xdc   :  { %2792 = vpow2.f32 %v2314_v50  ;;  %v2496_v50 = vld [vmem:[#allocation8 + $0x168] sm:$0xf0]  ;;  %v1187_v7 = vmul.f32 %v3044_v57, %v1186_v43  ;;  %v1182_v31 = vsel %vm3095_vm8, %v1181_v62, %v1177_v59  ;;  %v2563_v33 = vor.u32 %v2762_v27, %v2560_v30  ;;  %v2456_v12 = vld [vmem:[#allocation8 + $0x118] sm:$0xf0] }
  0xdd   :  { %2794 = vpow2.f32 %v2311_v21  ;;  %v2499_v60 = vor.u32 %v2746_v19, %v2496_v50  ;;  %v2387_v21 = vor.u32 %v2718_v6, %v2384_v10  ;;  %v1233_v50 = vmul.f32 %v1182_v31, %v2990_v42  ;;  %v2740_v42 = vld [vmem:[#allocation8 + $0x134] sm:$0xf] }
  0xde   :  { %v564_v52 = vpop.f32.mrf.mxu2  ;;  %v1188_v5 = vadd.f32 %v3044_v57, %v1187_v7  ;;  %1735 = vmatpush.bf16.msrb.mxu3 %v2571_v22  ;;  %v2475_v4 = vor.u32 %v2740_v42, %v2472_v0  ;;  %vm1144_vm0 = vweird.f32 %v3104_v23  ;;  %v2750_v0 = vld [vmem:[#allocation8 + $0x184] sm:$0xf] }
  0xdf   :  { %v578_v53 = vpop.f32.mrf.mxu3  ;;  %1721 = vmatpush.bf16.msrb.mxu2 %v2507_v34 }
  0xe0   :  { %v3057_v61 = vadd.f32 %v578_v53, %v564_v52  ;;  %v1127_v53 = vmul.f32 %v3031_v29, %v1126_v9  ;;  %v2395_v9 = vor.u32 %v2720_v45, %v2392_v49  ;;  %v2480_v45 = vld [vmem:[#allocation8 + $0x148] sm:$0xf0]  ;;  %v1196_v49 = vor.u32 1.1754944e-38, %v1195_v13 }
  0xe1   :  { %v1192_v39 = vsel %vm3142_vm14, %v3044_v57, %v1188_v5  ;;  %v2736_v5 = vld [vmem:[#allocation8 + $0x114] sm:$0xf] }
  0xe2   :  { %v2315_v32 = vmul.f32 -1.442695, %v3057_v61  ;;  %v2793_v52 = vpop.eup %2792  ;;  %v1128_v20 = vadd.f32 %v3031_v29, %v1127_v53  ;;  %1713 = vmatpush.bf16.msrb.mxu1 %v2395_v9  ;;  %v2483_v53 = vor.u32 %v2742_v44, %v2480_v45  ;;  %1736 = vmatpush.bf16.msrb.mxu3 %v2563_v33  ;;  %v1197_v7 = vsel %vm1194_vm15, %v1196_v49, %v1192_v39  ;;  %v2758_v9 = vld [vmem:[#allocation8 + $0x1c4] sm:$0xf] }
  0xe3   :  { %v3112_v14 = vadd.f32 1.0, %v2793_v52  ;;  %1722 = vmatpush.bf16.msrb.mxu2 %v2499_v60  ;;  %v2795_v55 = vpop.eup %2794  ;;  %v2544_v60 = vld [vmem:[#allocation8 + $0x1c8] sm:$0xf0]  ;;  %v2459_v35 = vor.u32 %v2736_v5, %v2456_v12 }
  0xe4   :  { %2796 = vpow2.f32 %v2315_v32  ;;  %v1132_v47 = vsel %vm3123_vm12, %v3031_v29, %v1128_v20  ;;  %v2547_v13 = vor.u32 %v2758_v9, %v2544_v60  ;;  %v2464_v20 = vld [vmem:[#allocation8 + $0x128] sm:$0xf0] }
  0xe5   :  { %2798 = vrcp.f32 %v3104_v23  ;;  %v1137_v2 = vsel %vm3134_vm13, %v1136_v3, %v1132_v47  ;;  %v2467_v8 = vor.u32 %v2738_v17, %v2464_v20  ;;  %v2752_v47 = vld [vmem:[#allocation8 + $0x194] sm:$0xf]  ;;  %v2520_v3 = vld [vmem:[#allocation8 + $0x198] sm:$0xf0]  ;;  %vm1204_vm2 = vweird.f32 %v3112_v14 }
  0xe6   :  { %2800 = vrcp.f32 %v3112_v14  ;;  %1714 = vmatpush.bf16.msrb.mxu1 %v2387_v21  ;;  %1737 = vmatpush.bf16.msrb.mxu3 %v2555_v51  ;;  %v1230_v15 = vmul.f32 %v1137_v2, %v2992_v46  ;;  %v1234_v21 = vmul.f32 %v1197_v7, %v2997_v1  ;;  %v1210_v39 = vand.u32 2147483648, %v3112_v14  ;;  %v2512_v2 = vld [vmem:[#allocation8 + $0x188] sm:$0xf0] }
  0xe7   :  { %1723 = vmatpush.bf16.msrb.mxu2 %v2491_v26  ;;  %v2536_v26 = vld [vmem:[#allocation8 + $0x1b8] sm:$0xf0] }
  0xe8   :  { %v2539_v46 = vor.u32 %v2756_v25, %v2536_v26 }
  0xea   :  { %v2797_v34 = vpop.eup %2796  ;;  %1738 = vmatpush.bf16.msrb.mxu3 %v2547_v13  ;;  %v1211_v13 = vor.u32 1.1754944e-38, %v1210_v39 }
  0xeb   :  { %v3159_v29 = vadd.f32 1.0, %v2797_v34  ;;  %v3161_v41 = vpop.eup %2798  ;;  %1724 = vmatpush.bf16.msrb.mxu2 %v2483_v53  ;;  %v2523_v53 = vor.u32 %v2752_v47, %v2520_v3 }
  0xec   :  { %v3165_v6 = vpop.eup %2800  ;;  %v1140_v10 = vmul.f32 %v3161_v41, %v3104_v23  ;;  %vm1145_vm1 = vweird.f32 %v3161_v41 }
  0xed   :  { %v1200_v22 = vmul.f32 %v3165_v6, %v3112_v14  ;;  %vm1205_vm3 = vweird.f32 %v3165_v6  ;;  %vm3199_vm4 = vmor %vm1144_vm0, %vm1145_vm1  ;;  %vm1219_vm10 = vweird.f32 %v3159_v29  ;;  %v1225_v17 = vand.u32 2147483648, %v3159_v29 }
  0xee   :  { %v974_v48 = vpop.f32.mrf.mxu0  ;;  %v1141_v27 = vsub.f32 1.0, %v1140_v10  ;;  %1739 = vmatpush.bf16.msrb.mxu3 %v2539_v46  ;;  %vm3207_vm5 = vmor %vm1204_vm2, %vm1205_vm3  ;;  %v2515_v10 = vor.u32 %v2750_v0, %v2512_v2 }
  0xef   :  { %v988_v63 = vpop.f32.mrf.mxu1  ;;  %1725 = vmatpush.bf16.msrb.mxu2 %v2475_v4  ;;  %v1201_v1 = vsub.f32 1.0, %v1200_v22  ;;  %v1226_v12 = vor.u32 1.1754944e-38, %v1225_v17 }
  0xf0   :  { %v989_v37 = vadd.f32 %v988_v63, %v974_v48  ;;  %v3154_v48 = vadd.f32 1.0, %v2795_v55  ;;  %v1142_v44 = vmul.f32 %v3161_v41, %v1141_v27 }
  0xf1   :  { %v1202_v49 = vmul.f32 %v3165_v6, %v1201_v1 }
  0xf2   :  { %v1237_v62 = vmul.f32 %v1229_v40, %v989_v37  ;;  %2802 = vrcp.f32 %v3154_v48  ;;  %v2734_v37 = vld [vmem:[#allocation8 + $0x104] sm:$0xf]  ;;  %v1143_v54 = vadd.f32 %v3161_v41, %v1142_v44  ;;  %vm1159_vm7 = vweird.f32 %v3154_v48 }
  0xf3   :  { %2804 = vrcp.f32 %v3159_v29  ;;  %1726 = vmatpush.bf16.msrb.mxu2 %v2467_v8 }
  0xf6   :  { %v1002_v32 = vpop.f32.mrf.mxu2  ;;  %v976_v43 = vpop.f32.mrf.mxu0 }
  0xf7   :  { %v1016_v38 = vpop.f32.mrf.mxu3  ;;  %v990_v19 = vpop.f32.mrf.mxu1  ;;  %1727 = vmatpush.bf16.msrb.mxu2 %v2459_v35 }
  0xf8   :  { %v991_v52 = vadd.f32 %v990_v19, %v976_v43  ;;  %v1017_v11 = vadd.f32 %v1016_v38, %v1002_v32  ;;  %v3178_v31 = vpop.eup %2802  ;;  %v2754_v32 = vld [vmem:[#allocation8 + $0x1a4] sm:$0xf]  ;;  %v2448_v38 = vld [vmem:[#allocation8 + $0x108] sm:$0xf0] }
  0xf9   :  { %v3180_v33 = vpop.eup %2804  ;;  %v2531_v43 = vor.u32 %v2754_v32, %v2528_v36  ;;  %v1155_v45 = vmul.f32 %v3178_v31, %v3154_v48  ;;  %v2451_v19 = vor.u32 %v2734_v37, %v2448_v38  ;;  %vm1160_vm8 = vweird.f32 %v3178_v31 }
  0xfa   :  { %v1241_v63 = vmul.f32 %v1233_v50, %v991_v52  ;;  %v1238_v30 = vmul.f32 %v1230_v15, %v1017_v11  ;;  %v1215_v40 = vmul.f32 %v3180_v33, %v3159_v29  ;;  %v1148_v50 = vand.u32 2147483647, %v3104_v23  ;;  %vm3234_vm12 = vmor %vm1159_vm7, %vm1160_vm8 }
  0xfb   :  { %v1150_v52 = vand.u32 2147483648, %v3104_v23  ;;  %1740 = vmatpush.bf16.msrb.mxu3 %v2531_v43  ;;  %v1156_v56 = vsub.f32 1.0, %v1155_v45  ;;  %v1208_v23 = vand.u32 2147483647, %v3112_v14  ;;  %1728 = vmatpush.bf16.msrb.mxu2 %v2451_v19  ;;  %v1147_v11 = vsel %vm3199_vm4, %v3161_v41, %v1143_v54 }
  0xfc   :  { %v3168_v57 = vpack.c.bf16 %v1241_v63, %v1237_v62  ;;  %v1216_v51 = vsub.f32 1.0, %v1215_v40  ;;  %v1203_v63 = vadd.f32 %v3165_v6, %v1202_v49  ;;  %vm3211_vm6 = vcmp.eq.f32.partialorder %v1148_v50, 8.507059e+37 }
  0xfd   :  { %v1151_v60 = vor.u32 1.1754944e-38, %v1150_v52  ;;  %vm1209_vm9 = vcmp.eq.f32.partialorder %v1208_v23, 8.507059e+37  ;;  %vm1220_vm11 = vweird.f32 %v3180_v33 }
  0xfe   :  { %v1004_v59 = vpop.f32.mrf.mxu2  ;;  %1645 = vmatmul.bf16.vlgmr.msra.gmra.mxu0 %v3168_v57  ;;  %v1217_v14 = vmul.f32 %v3180_v33, %v1216_v51  ;;  %v1207_v15 = vsel %vm3207_vm5, %v3165_v6, %v1203_v63  ;;  %vm3240_vm13 = vmor %vm1219_vm10, %vm1220_vm11 }
  0xff   :  { %v1018_v16 = vpop.f32.mrf.mxu3  ;;  %1741 = vmatpush.bf16.msrb.mxu3 %v2523_v53  ;;  %v1152_v41 = vsel %vm3211_vm6, %v1151_v60, %v1147_v11  ;;  %v1212_v6 = vsel %vm1209_vm9, %v1211_v13, %v1207_v15 }
 0x100   :  { %v1019_v24 = vadd.f32 %v1018_v16, %v1004_v59  ;;  %v1157_v59 = vmul.f32 %v3178_v31, %v1156_v56  ;;  %v1165_v16 = vand.u32 2147483648, %v3154_v48  ;;  %v1218_v22 = vadd.f32 %v3180_v33, %v1217_v14 }
 0x101   :  { %v1231_v46 = vmul.f32 %v1152_v41, %v3024_v18  ;;  %v1235_v5 = vmul.f32 %v1212_v6, %v3034_v28 }
 0x102   :  { %v1242_v55 = vmul.f32 %v1234_v21, %v1019_v24  ;;  %v1158_v20 = vadd.f32 %v3178_v31, %v1157_v59  ;;  %v1223_v24 = vand.u32 2147483647, %v3159_v29  ;;  %v1222_v1 = vsel %vm3240_vm13, %v3180_v33, %v1218_v22 }
 0x103   :  { %1742 = vmatpush.bf16.msrb.mxu3 %v2515_v10 }
 0x104   :  { %v3182_v34 = vpack.c.bf16 %v1242_v55, %v1238_v30  ;;  %v1166_v30 = vor.u32 1.1754944e-38, %v1165_v16  ;;  %v1162_v29 = vsel %vm3234_vm12, %v3178_v31, %v1158_v20  ;;  %vm1224_vm15 = vcmp.eq.f32.partialorder %v1223_v24, 8.507059e+37 }
 0x105   :  { %v1227_v18 = vsel %vm1224_vm15, %v1226_v12, %v1222_v1 }
 0x106   :  { %1659 = vmatmul.bf16.vlgmr.msra.gmra.mxu1 %v3182_v34  ;;  %v1236_v45 = vmul.f32 %v1227_v18, %v3057_v61 }
 0x10e   :  { %v1030_v42 = vpop.f32.mrf.mxu0  ;;  %1701 = vmatmul.bf16.vlgmr.msrb.gmra.mxu0 %v3168_v57  ;;  %v1163_v57 = vand.u32 2147483647, %v3154_v48 }
 0x10f   :  { %v1044_v7 = vpop.f32.mrf.mxu1 }
 0x110   :  { %v1045_v48 = vadd.f32 %v1044_v7, %v1030_v42  ;;  %vm1164_vm14 = vcmp.eq.f32.partialorder %v1163_v57, 8.507059e+37 }
 0x111   :  { %v1167_v37 = vsel %vm1164_vm14, %v1166_v30, %v1162_v29 }
 0x112   :  { %v1239_v35 = vmul.f32 %v1231_v46, %v1045_v48 }
 0x116   :  { %v1058_v8 = vpop.f32.mrf.mxu2  ;;  %v1032_v27 = vpop.f32.mrf.mxu0  ;;  %1715 = vmatmul.bf16.vlgmr.msrb.gmra.mxu1 %v3182_v34  ;;  %v1232_v34 = vmul.f32 %v1167_v37, %v3049_v58 }
 0x117   :  { %v1072_v26 = vpop.f32.mrf.mxu3  ;;  %v1046_v55 = vpop.f32.mrf.mxu1 }
 0x118   :  { %v1047_v32 = vadd.f32 %v1046_v55, %v1032_v27  ;;  %v1073_v28 = vadd.f32 %v1072_v26, %v1058_v8 }
 0x11a   :  { %v1243_v36 = vmul.f32 %v1235_v5, %v1047_v32  ;;  %v1240_v40 = vmul.f32 %v1232_v34, %v1073_v28 }
 0x11c   :  { %v1251_v38 = vpack.c.bf16 %v1243_v36, %v1239_v35 }
 0x11e   :  { %v1060_v43 = vpop.f32.mrf.mxu2  ;;  %1673 = vmatmul.bf16.vlgmr.msra.gmra.mxu2 %v1251_v38 }
 0x11f   :  { %v1074_v44 = vpop.f32.mrf.mxu3 }
 0x120   :  { %v1075_v31 = vadd.f32 %v1074_v44, %v1060_v43 }
 0x122   :  { %v1244_v47 = vmul.f32 %v1236_v45, %v1075_v31 }
 0x124   :  { %v1252_v3 = vpack.c.bf16 %v1244_v47, %v1240_v40 }
 0x126   :  { %1687 = vmatmul.bf16.vlgmr.msra.gmra.mxu3 %v1252_v3 }
 0x12e   :  { %1729 = vmatmul.bf16.vlgmr.msrb.gmra.mxu2 %v1251_v38 }
 0x136   :  { %1743 = vmatmul.bf16.vlgmr.msrb.gmra.mxu3 %v1252_v3 }
 0x17b   :  { %v1646_v49 = vpop.f32.mrf.mxu0 }
 0x183   :  { %v1660_v33 = vpop.f32.mrf.mxu1  ;;  %v1648_v54 = vpop.f32.mrf.mxu0 }
 0x184   :  { %v1661_v50 = vadd.f32 %v1660_v33, %v1646_v49 }
 0x18b   :  { %v1662_v52 = vpop.f32.mrf.mxu1  ;;  %v1702_v42 = vpop.f32.mrf.mxu0 }
 0x18c   :  { %v1663_v58 = vadd.f32 %v1662_v52, %v1648_v54 }
 0x193   :  { %v1716_v62 = vpop.f32.mrf.mxu1  ;;  %v1704_v10 = vpop.f32.mrf.mxu0 }
 0x194   :  { %v1717_v2 = vadd.f32 %v1716_v62, %v1702_v42 }
 0x19b   :  { %v1718_v60 = vpop.f32.mrf.mxu1 }
 0x19c   :  { %v1719_v59 = vadd.f32 %v1718_v60, %v1704_v10 }
 0x1a1   :  { %v1674_v19 = vpop.f32.mrf.mxu2 }
 0x1a2   :  { %v1675_v53 = vadd.f32 %v1674_v19, %v1661_v50 }
 0x1a9   :  { %v1688_v56 = vpop.f32.mrf.mxu3  ;;  %v1676_v51 = vpop.f32.mrf.mxu2 }
 0x1aa   :  { %v1689_v39 = vadd.f32 %v1688_v56, %v1675_v53  ;;  %v1677_v61 = vadd.f32 %v1676_v51, %v1663_v58 }
 0x1ac   :  { %1764 = vst [vmem:[#allocation9] sm:$0xff] %v1689_v39 }
 0x1b1   :  { %v1690_v63 = vpop.f32.mrf.mxu3  ;;  %v1730_v0 = vpop.f32.mrf.mxu2 }
 0x1b2   :  { %v1691_v23 = vadd.f32 %v1690_v63, %v1677_v61  ;;  %v1731_v4 = vadd.f32 %v1730_v0, %v1717_v2 }
 0x1b4   :  { %1766 = vst [vmem:[#allocation9 + $0x10] sm:$0xff] %v1691_v23 }
 0x1b9   :  { %v1744_v7 = vpop.f32.mrf.mxu3  ;;  %v1732_v11 = vpop.f32.mrf.mxu2 }
 0x1ba   :  { %v1745_v9 = vadd.f32 %v1744_v7, %v1731_v4  ;;  %v1733_v13 = vadd.f32 %v1732_v11, %v1719_v59 }
 0x1bc   :  { %1765 = vst [vmem:[#allocation9 + $0x8] sm:$0xff] %v1745_v9 }
 0x1c1   :  { %v1746_v14 = vpop.f32.mrf.mxu3 }
 0x1c2   :  { %v1747_v15 = vadd.f32 %v1746_v14, %v1733_v13 }
 0x1c4   :  { %1767 = vst [vmem:[#allocation9 + $0x18] sm:$0xff] %v1747_v15 }
 0x1c5   :  { %1780 = dma.vmem_to_hbm [thread:$0]  %s1773_s13, 512, %s1775_s16, [#allocation5], %s2909_s23, %s2909_s23, %s2910_s24  }
 0x1c6   :  { %2906 = dma.done.wait [#allocation5], 512  }
 0x1c7   :  { %2907 = vsyncadd [#allocation5], 4294966784 }
 0x1c8   :  { %1785 = vsyncpa [#allocation4], 1 }
 0x1c9   :  { %1786 = vsyncpa [#allocation7], 1 }
 0x1ca   :  { %1787 = vsyncpa [#allocation5], 1 }

</bundles_post_ra>
